<compile_context>
chip_gen: v5e
topology: v5e:2x2
jax: 0.10.0
libtpu: 0.0.40
codegen_flags: <defaults>
</compile_context>

<pallas_src>
import functools

import jax
import jax.numpy as jnp
from jax.experimental import pallas as pl
from jax.experimental.pallas import tpu as pltpu


def _atomwise_kernel(x_ref, idx_ref, w_ref, b_ref, y_ref, *, sub_rows):
    # x_ref:   (tile_n, n_in)   f32   per-atom representation tile
    # idx_ref: (tile_n, 1)      int32 molecule id per atom (padded rows -> sentinel)
    # w_ref:   (n_in, 1)        f32   energy-head column of the Linear weight
    # b_ref:   (1,)             f32   energy-head bias (SMEM scalar)
    # y_ref:   (1, maxm_pad)    f32   per-molecule partial accumulator (resident
    #                                 across the inner "arbitrary" grid axis)
    @pl.when(pl.program_id(1) == 0)
    def _init():
        y_ref[...] = jnp.zeros_like(y_ref)

    tile_n = x_ref.shape[0]
    maxm_pad = y_ref.shape[1]
    num_sub = tile_n // sub_rows

    w = w_ref[...]                       # hoisted: resident VMEM weight column
    b0 = b_ref[0]                        # hoisted: SMEM scalar bias
    # Hoisted, tiny iota: (1, maxm_pad); broadcasting in the compare supplies the
    # sublane (atom) dimension.
    lane_m = jax.lax.broadcasted_iota(jnp.int32, (1, maxm_pad), 1)

    def body(c, acc):
        r0 = pl.multiple_of(c * sub_rows, sub_rows)
        x_sub = x_ref[pl.ds(r0, sub_rows), :]            # (sub, n_in) f32
        idx_sub = idx_ref[pl.ds(r0, sub_rows), :]        # (sub, 1)    i32
        # Per-atom energy head: e_i = x_i . w0 + b0 (single used Linear column).
        # TODO(synk): PhysNetEnergy is not defined in the provided source; it is
        # approximated as selecting the energy head (first Linear output column).
        e = jnp.dot(x_sub, w, preferred_element_type=jnp.float32) + b0   # (sub, 1)
        # index_add for this sub-chunk: route each atom's energy to its
        # molecule's lane (padded atoms carry an out-of-range id -> no lane),
        # then sublane-reduce.  Live set stays a few vregs.
        contrib = jnp.where(lane_m == idx_sub, e, 0.0)                   # (sub, maxm_pad)
        return acc + jnp.sum(contrib, axis=0, keepdims=True)

    acc = jax.lax.fori_loop(
        0, num_sub, body, jnp.zeros((1, maxm_pad), jnp.float32), unroll=True)
    y_ref[...] += acc


def atomwise_forward(scalar_representation, weight, bias, idx_m, n_molecules,
                     aggregation_mode="sum", tile_n=2048, num_partials=2):
    """Pallas implementation of Atomwise.forward (n_out=1, 'sum' aggregation).

    scalar_representation: (n_atoms, n_in) float
    weight:                (2, n_in) float   (PyTorch nn.Linear layout)
    bias:                  (2,)      float
    idx_m:                 (n_atoms,) int32, molecule id per atom
    n_molecules:           static int, == int(idx_m[-1]) + 1 in the PyTorch code
    returns:               (n_molecules,) float32
    """
    # TODO(synk): aggregation_mode='avg' needs inputs[structure.n_atoms]; only 'sum' here.
    assert aggregation_mode == "sum", "only the default 'sum' mode is implemented"

    x = jnp.asarray(scalar_representation, jnp.float32)
    n_atoms, n_in = x.shape
    assert n_atoms > 0
    maxm = int(n_molecules)
    maxm_pad = ((maxm + 127) // 128) * 128            # lane-dense output width

    sub_rows = 128
    atoms_padded = ((n_atoms + sub_rows - 1) // sub_rows) * sub_rows
    tile_eff = min(int(tile_n), atoms_padded)
    tile_eff = max(sub_rows, (tile_eff // sub_rows) * sub_rows)

    num_tiles = (n_atoms + tile_eff - 1) // tile_eff
    nparts = max(1, min(int(num_partials), num_tiles))   # dual-TC split (v7x)
    tiles_per_part = (num_tiles + nparts - 1) // nparts
    last_tile = num_tiles - 1

    # Pad ONLY idx (4 B/atom): ragged-tail rows of the last real x block and any
    # phantom tiles get a sentinel id >= maxm_pad and contribute nothing.
    total_rows = nparts * tiles_per_part * tile_eff
    idx_col = jnp.asarray(idx_m, jnp.int32).reshape(n_atoms, 1)
    pad_rows = total_rows - n_atoms
    if pad_rows:
        idx_col = jnp.pad(idx_col, ((0, pad_rows), (0, 0)), constant_values=maxm_pad)

    # Only the energy-head column of the Linear is live; fold it out here.
    w_col = jnp.asarray(weight, jnp.float32)[0].reshape(n_in, 1)
    b0 = jnp.asarray(bias, jnp.float32)[0].reshape(1)

    def x_map(c, i):
        # Clamp phantom tiles (beyond the real tile count) onto the last real
        # block: safe reads; the idx sentinel masks their contribution.
        return (jnp.minimum(c * tiles_per_part + i, last_tile), 0)

    def idx_map(c, i):
        return (c * tiles_per_part + i, 0)

    cost = pl.CostEstimate(
        flops=2 * n_atoms * n_in,
        transcendentals=0,
        bytes_accessed=n_atoms * (n_in * 4 + 4) + nparts * maxm_pad * 4,
    )

    kernel = functools.partial(_atomwise_kernel, sub_rows=sub_rows)

    y = pl.pallas_call(
        kernel,
        out_shape=jax.ShapeDtypeStruct((1, nparts * maxm_pad), jnp.float32),
        grid=(nparts, tiles_per_part),
        in_specs=[
            pl.BlockSpec((tile_eff, n_in), x_map),               # x tile (f32, no copy)
            pl.BlockSpec((tile_eff, 1), idx_map),                # idx tile (padded)
            pl.BlockSpec((n_in, 1), lambda c, i: (0, 0)),        # w0 (resident)
            pl.BlockSpec(memory_space=pltpu.MemorySpace.SMEM),   # b0 scalar
        ],
        out_specs=pl.BlockSpec((1, maxm_pad), lambda c, i: (0, c)),  # per-partial row
        compiler_params=pltpu.CompilerParams(
            dimension_semantics=("parallel", "arbitrary"),
            vmem_limit_bytes=48 * 1024 * 1024,
        ),
        cost_estimate=cost,
    )(x, idx_col, w_col, b0)

    # Combine the per-TensorCore partial rows and strip lane padding.
    return y.reshape(nparts, maxm_pad).sum(axis=0)[:maxm]


def _reference_forward(x, weight, bias, idx_m, n_molecules):
    """Pure-JAX f32 reference of the same semantics."""
    x = jnp.asarray(x, jnp.float32)
    w = jnp.asarray(weight, jnp.float32)
    b = jnp.asarray(bias, jnp.float32)
    yi = jnp.dot(x, w.T, precision=jax.lax.Precision.HIGHEST) + b
    e_i = yi[:, 0:1]                                   # PhysNetEnergy approximation
    y = jnp.zeros((n_molecules, 1), jnp.float32).at[jnp.asarray(idx_m)].add(e_i)
    return y[:, 0]


if __name__ == "__main__":
    key = jax.random.PRNGKey(0)
    k_x, k_w, k_b = jax.random.split(key, 3)

    n_atoms = 512       # total atoms across the batch
    n_in = 128          # representation width
    n_mol = 4           # molecules in the batch

    # Deterministic synthetic inputs / parameters (nn.Linear(n_in, 2) layout).
    x = jax.random.normal(k_x, (n_atoms, n_in), dtype=jnp.float32)
    weight = 0.1 * jax.random.normal(k_w, (2, n_in), dtype=jnp.float32)
    bias = 0.1 * jax.random.normal(k_b, (2,), dtype=jnp.float32)
    idx_m = jnp.repeat(jnp.arange(n_mol, dtype=jnp.int32), n_atoms // n_mol)

    fwd = jax.jit(
        atomwise_forward,
        static_argnames=("n_molecules", "aggregation_mode", "tile_n", "num_partials"),
    )
    y = fwd(x, weight, bias, idx_m, n_molecules=n_mol)
    y = jax.block_until_ready(y)

    y_ref = _reference_forward(x, weight, bias, idx_m, n_mol)
    assert y.shape == (n_mol,)
    # f32 throughout -> tight tolerance vs the f32 reference.
    assert jnp.allclose(y, y_ref, rtol=2e-3, atol=2e-3), (y, y_ref)

    print("KERNEL_OK")
</pallas_src>

<mosaic_0001>
module attributes {stable_mosaic.version = 11 : i64} {
  func.func @_atomwise_kernel(%arg0: i32, %arg1: i32, %arg2: memref<512x128xf32, #tpu.memory_space<vmem>>, %arg3: memref<512x1xi32, #tpu.memory_space<vmem>>, %arg4: memref<128x1xf32, #tpu.memory_space<vmem>>, %arg5: memref<1xf32, #tpu.memory_space<smem>>, %arg6: memref<1x128xf32, #tpu.memory_space<vmem>>) attributes {dimension_semantics = [#tpu.dimension_semantics<parallel>, #tpu.dimension_semantics<arbitrary>], iteration_bounds = array<i64: 1, 1>, scalar_prefetch = 0 : i64, scratch_operands = 0 : i64, tpu.core_type = #tpu.core_type<tc>, window_params = [{transform_indices = @transform_0, window_bounds = array<i64: 512, 128>}, {transform_indices = @transform_1, window_bounds = array<i64: 512, 1>}, {pipeline_mode = #tpu.pipeline_mode<synchronous>, transform_indices = @transform_2, window_bounds = array<i64: 128, 1>}, {transform_indices = @transform_3, window_bounds = array<i64: 1>}, {transform_indices = @transform_4, window_bounds = array<i64: 1, 128>}]} {
    %c0_i32 = arith.constant 0 : i32
    %0 = arith.cmpi eq, %arg1, %c0_i32 : i32
    %1 = arith.extui %0 : i1 to i32
    %c0_i32_0 = arith.constant 0 : i32
    %2 = arith.cmpi ne, %1, %c0_i32_0 : i32
    scf.if %2 {
      %cst_31 = arith.constant 0.000000e+00 : f32
      %86 = vector.broadcast %cst_31 : f32 to vector<1x128xf32>
      %c0_32 = arith.constant 0 : index
      %c0_33 = arith.constant 0 : index
      %87 = vector.load %arg6[%c0_32, %c0_33] : memref<1x128xf32, #tpu.memory_space<vmem>>, vector<1x128xf32>
      tpu.vector_store %arg6[%c0_32, %c0_33], %86 {strides = array<i32>} : memref<1x128xf32, #tpu.memory_space<vmem>>, vector<1x128xf32>,
    } else {
    }
    %c0 = arith.constant 0 : index
    %c0_1 = arith.constant 0 : index
    %3 = vector.load %arg4[%c0, %c0_1] : memref<128x1xf32, #tpu.memory_space<vmem>>, vector<128x1xf32>
    %c0_2 = arith.constant 0 : index
    %4 = memref.load %arg5[%c0_2] : memref<1xf32, #tpu.memory_space<smem>>
    %5 = tpu.iota {dimensions = array<i32: 1>} : vector<1x128xi32>
    %cst = arith.constant 0.000000e+00 : f32
    %6 = vector.broadcast %cst : f32 to vector<1x128xf32>
    %c0_i32_3 = arith.constant 0 : i32
    %c128_i32 = arith.constant 128 : i32
    %7 = arith.muli %c0_i32_3, %c128_i32 : i32
    %8 = tpu.assume_multiple %7, 128 : i32
    %9 = arith.index_cast %8 : i32 to index
    %c0_4 = arith.constant 0 : index
    %10 = vector.load %arg2[%9, %c0_4] : memref<512x128xf32, #tpu.memory_space<vmem>>, vector<128x128xf32>
    %11 = arith.index_cast %8 : i32 to index
    %c0_5 = arith.constant 0 : index
    %12 = vector.load %arg3[%11, %c0_5] : memref<512x1xi32, #tpu.memory_space<vmem>>, vector<128x1xi32>
    %cst_6 = arith.constant dense<0.000000e+00> : vector<128x1xf32>
    %13 = tpu.matmul %10, %3, %cst_6 {dimension_numbers = #tpu.dot_dimension_numbers<[1], [0], [0], [1], [0, 0, 1, 1], [], []>} : vector<128x128xf32>, vector<128x1xf32>, vector<128x1xf32> -> vector<128x1xf32>
    %14 = vector.broadcast %4 : f32 to vector<128x1xf32>
    %15 = arith.addf %13, %14 : vector<128x1xf32>
    %16 = vector.broadcast %5 : vector<1x128xi32> to vector<128x128xi32>
    %17 = vector.broadcast %12 : vector<128x1xi32> to vector<128x128xi32>
    %18 = arith.cmpi eq, %16, %17 : vector<128x128xi32>
    %cst_7 = arith.constant 0.000000e+00 : f32
    %19 = vector.shape_cast %15 : vector<128x1xf32> to vector<128x1xf32>
    %20 = vector.broadcast %19 : vector<128x1xf32> to vector<128x128xf32>
    %21 = vector.broadcast %cst_7 : f32 to vector<128x128xf32>
    %22 = arith.select %18, %20, %21 : vector<128x128xi1>, vector<128x128xf32>
    %cst_8 = arith.constant dense<0.000000e+00> : vector<128xf32>
    %23 = vector.multi_reduction <add>, %22, %cst_8 [0] : vector<128x128xf32> to vector<128xf32>
    %24 = vector.shape_cast %23 : vector<128xf32> to vector<1x128xf32>
    %25 = arith.addf %6, %24 : vector<1x128xf32>
    %c1_i32 = arith.constant 1 : i32
    %c128_i32_9 = arith.constant 128 : i32
    %26 = arith.muli %c1_i32, %c128_i32_9 : i32
    %27 = tpu.assume_multiple %26, 128 : i32
    %28 = arith.index_cast %27 : i32 to index
    %c0_10 = arith.constant 0 : index
    %29 = vector.load %arg2[%28, %c0_10] : memref<512x128xf32, #tpu.memory_space<vmem>>, vector<128x128xf32>
    %30 = arith.index_cast %27 : i32 to index
    %c0_11 = arith.constant 0 : index
    %31 = vector.load %arg3[%30, %c0_11] : memref<512x1xi32, #tpu.memory_space<vmem>>, vector<128x1xi32>
    %cst_12 = arith.constant dense<0.000000e+00> : vector<128x1xf32>
    %32 = tpu.matmul %29, %3, %cst_12 {dimension_numbers = #tpu.dot_dimension_numbers<[1], [0], [0], [1], [0, 0, 1, 1], [], []>} : vector<128x128xf32>, vector<128x1xf32>, vector<128x1xf32> -> vector<128x1xf32>
    %33 = vector.broadcast %4 : f32 to vector<128x1xf32>
    %34 = arith.addf %32, %33 : vector<128x1xf32>
    %35 = vector.broadcast %5 : vector<1x128xi32> to vector<128x128xi32>
    %36 = vector.broadcast %31 : vector<128x1xi32> to vector<128x128xi32>
    %37 = arith.cmpi eq, %35, %36 : vector<128x128xi32>
    %cst_13 = arith.constant 0.000000e+00 : f32
    %38 = vector.shape_cast %34 : vector<128x1xf32> to vector<128x1xf32>
    %39 = vector.broadcast %38 : vector<128x1xf32> to vector<128x128xf32>
    %40 = vector.broadcast %cst_13 : f32 to vector<128x128xf32>
    %41 = arith.select %37, %39, %40 : vector<128x128xi1>, vector<128x128xf32>
    %cst_14 = arith.constant dense<0.000000e+00> : vector<128xf32>
    %42 = vector.multi_reduction <add>, %41, %cst_14 [0] : vector<128x128xf32> to vector<128xf32>
    %43 = vector.shape_cast %42 : vector<128xf32> to vector<1x128xf32>
    %44 = arith.addf %25, %43 : vector<1x128xf32>
    %c2_i32 = arith.constant 2 : i32
    %c128_i32_15 = arith.constant 128 : i32
    %45 = arith.muli %c2_i32, %c128_i32_15 : i32
    %46 = tpu.assume_multiple %45, 128 : i32
    %47 = arith.index_cast %46 : i32 to index
    %c0_16 = arith.constant 0 : index
    %48 = vector.load %arg2[%47, %c0_16] : memref<512x128xf32, #tpu.memory_space<vmem>>, vector<128x128xf32>
    %49 = arith.index_cast %46 : i32 to index
    %c0_17 = arith.constant 0 : index
    %50 = vector.load %arg3[%49, %c0_17] : memref<512x1xi32, #tpu.memory_space<vmem>>, vector<128x1xi32>
    %cst_18 = arith.constant dense<0.000000e+00> : vector<128x1xf32>
    %51 = tpu.matmul %48, %3, %cst_18 {dimension_numbers = #tpu.dot_dimension_numbers<[1], [0], [0], [1], [0, 0, 1, 1], [], []>} : vector<128x128xf32>, vector<128x1xf32>, vector<128x1xf32> -> vector<128x1xf32>
    %52 = vector.broadcast %4 : f32 to vector<128x1xf32>
    %53 = arith.addf %51, %52 : vector<128x1xf32>
    %54 = vector.broadcast %5 : vector<1x128xi32> to vector<128x128xi32>
    %55 = vector.broadcast %50 : vector<128x1xi32> to vector<128x128xi32>
    %56 = arith.cmpi eq, %54, %55 : vector<128x128xi32>
    %cst_19 = arith.constant 0.000000e+00 : f32
    %57 = vector.shape_cast %53 : vector<128x1xf32> to vector<128x1xf32>
    %58 = vector.broadcast %57 : vector<128x1xf32> to vector<128x128xf32>
    %59 = vector.broadcast %cst_19 : f32 to vector<128x128xf32>
    %60 = arith.select %56, %58, %59 : vector<128x128xi1>, vector<128x128xf32>
    %cst_20 = arith.constant dense<0.000000e+00> : vector<128xf32>
    %61 = vector.multi_reduction <add>, %60, %cst_20 [0] : vector<128x128xf32> to vector<128xf32>
    %62 = vector.shape_cast %61 : vector<128xf32> to vector<1x128xf32>
    %63 = arith.addf %44, %62 : vector<1x128xf32>
    %c3_i32 = arith.constant 3 : i32
    %c128_i32_21 = arith.constant 128 : i32
    %64 = arith.muli %c3_i32, %c128_i32_21 : i32
    %65 = tpu.assume_multiple %64, 128 : i32
    %66 = arith.index_cast %65 : i32 to index
    %c0_22 = arith.constant 0 : index
    %67 = vector.load %arg2[%66, %c0_22] : memref<512x128xf32, #tpu.memory_space<vmem>>, vector<128x128xf32>
    %68 = arith.index_cast %65 : i32 to index
    %c0_23 = arith.constant 0 : index
    %69 = vector.load %arg3[%68, %c0_23] : memref<512x1xi32, #tpu.memory_space<vmem>>, vector<128x1xi32>
    %cst_24 = arith.constant dense<0.000000e+00> : vector<128x1xf32>
    %70 = tpu.matmul %67, %3, %cst_24 {dimension_numbers = #tpu.dot_dimension_numbers<[1], [0], [0], [1], [0, 0, 1, 1], [], []>} : vector<128x128xf32>, vector<128x1xf32>, vector<128x1xf32> -> vector<128x1xf32>
    %71 = vector.broadcast %4 : f32 to vector<128x1xf32>
    %72 = arith.addf %70, %71 : vector<128x1xf32>
    %73 = vector.broadcast %5 : vector<1x128xi32> to vector<128x128xi32>
    %74 = vector.broadcast %69 : vector<128x1xi32> to vector<128x128xi32>
    %75 = arith.cmpi eq, %73, %74 : vector<128x128xi32>
    %cst_25 = arith.constant 0.000000e+00 : f32
    %76 = vector.shape_cast %72 : vector<128x1xf32> to vector<128x1xf32>
    %77 = vector.broadcast %76 : vector<128x1xf32> to vector<128x128xf32>
    %78 = vector.broadcast %cst_25 : f32 to vector<128x128xf32>
    %79 = arith.select %75, %77, %78 : vector<128x128xi1>, vector<128x128xf32>
    %cst_26 = arith.constant dense<0.000000e+00> : vector<128xf32>
    %80 = vector.multi_reduction <add>, %79, %cst_26 [0] : vector<128x128xf32> to vector<128xf32>
    %81 = vector.shape_cast %80 : vector<128xf32> to vector<1x128xf32>
    %82 = arith.addf %63, %81 : vector<1x128xf32>
    %c4_i32 = arith.constant 4 : i32
    %c0_27 = arith.constant 0 : index
    %c0_28 = arith.constant 0 : index
    %83 = vector.load %arg6[%c0_27, %c0_28] : memref<1x128xf32, #tpu.memory_space<vmem>>, vector<1x128xf32>
    %84 = arith.addf %83, %82 : vector<1x128xf32>
    %c0_29 = arith.constant 0 : index
    %c0_30 = arith.constant 0 : index
    %85 = vector.load %arg6[%c0_29, %c0_30] : memref<1x128xf32, #tpu.memory_space<vmem>>, vector<1x128xf32>
    tpu.vector_store %arg6[%c0_29, %c0_30], %84 {strides = array<i32>} : memref<1x128xf32, #tpu.memory_space<vmem>>, vector<1x128xf32>,
    return
  }
  func.func @transform_0(%arg0: i32, %arg1: i32) -> (i32, i32) {
    %c1_i32 = arith.constant 1 : i32
    %0 = arith.muli %arg0, %c1_i32 : i32
    %1 = arith.addi %0, %arg1 : i32
    %c0_i32 = arith.constant 0 : i32
    %2 = arith.minsi %1, %c0_i32 : i32
    %c0_i32_0 = arith.constant 0 : i32
    %c0_i32_1 = arith.constant 0 : i32
    return %2, %c0_i32_0 : i32, i32
  }
  func.func @transform_1(%arg0: i32, %arg1: i32) -> (i32, i32) {
    %c1_i32 = arith.constant 1 : i32
    %0 = arith.muli %arg0, %c1_i32 : i32
    %1 = arith.addi %0, %arg1 : i32
    %c0_i32 = arith.constant 0 : i32
    %c0_i32_0 = arith.constant 0 : i32
    return %1, %c0_i32 : i32, i32
  }
  func.func @transform_2(%arg0: i32, %arg1: i32) -> (i32, i32) {
    %c0_i32 = arith.constant 0 : i32
    %c0_i32_0 = arith.constant 0 : i32
    %c0_i32_1 = arith.constant 0 : i32
    return %c0_i32, %c0_i32_0 : i32, i32
  }
  func.func @transform_3(%arg0: i32, %arg1: i32) -> i32 {
    %c0_i32 = arith.constant 0 : i32
    %c0_i32_0 = arith.constant 0 : i32
    return %c0_i32 : i32
  }
  func.func @transform_4(%arg0: i32, %arg1: i32) -> (i32, i32) {
    %c0_i32 = arith.constant 0 : i32
    %c0_i32_0 = arith.constant 0 : i32
    return %c0_i32, %arg0 : i32, i32
  }
}

</mosaic_0001>

<bundles_post_ra>
// kernel: atomwise_forward.1
= control target key start
LH: loop header
LB: loop body
LE: loop exit
PB: predicated region body
PF: predicated region fallthrough
CT: control target
= control target key end

     0   :  { %v1339_v0 = vmov 0   ;;  %s2176_s2 = inlined_call_operand.vmem [shape: f32[128,1], index: 2, kind: input, shape index: {}]   ;;  %s2177_s1 = inlined_call_operand.vmem [shape: s32[512,1], index: 1, kind: input, shape index: {}]   ;;  %s2178_s0 = inlined_call_operand.vmem [shape: f32[512,128], index: 0, kind: input, shape index: {}]   ;;  %s2179_s3 = inlined_call_operand.<no memory space> [shape: f32[1], index: 3, kind: input, shape index: {}]   ;;  %s2180_s4 = inlined_call_operand.vmem [shape: f32[1,128], index: 4, kind: output, shape index: {}]  }
   0x1   :  { %1338 = vset.pattern.permute.xlu2 %v1339_v0  ;;  %1337 = vset.pattern.permute.xlu1 %v1339_v0  ;;  %v92_v1 = vld [vmem:[%s2176_s2 + $0x78] sm:$0xff]  ;;  %v116_v2 = vld [vmem:[%s2177_s1 + $0x20] sm:$0xff]  ;;  %v114_v3 = vld [vmem:[%s2177_s1 + $0x10] sm:$0xff] }
   0x2   :  { %1336 = vset.pattern.permute.xlu0 %v1339_v0  ;;  %691 = vmatpush.msra.mxu2 %v92_v1  ;;  %v112_v4 = vld [vmem:[%s2177_s1] sm:$0xff]  ;;  %v91_v5 = vld [vmem:[%s2176_s2 + $0x70] sm:$0xff]  ;;  %v90_v6 = vld [vmem:[%s2176_s2 + $0x68] sm:$0xff] }
   0x3   :  { %207 = vperm.xlu2 %1338, %v116_v2   ;;  %201 = vperm.xlu1 %1337, %v114_v3   ;;  %v89_v7 = vld [vmem:[%s2176_s2 + $0x60] sm:$0xff]  ;;  %v88_v8 = vld [vmem:[%s2176_s2 + $0x58] sm:$0xff]  ;;  %v117_v9 = vld [vmem:[%s2177_s1 + $0x28] sm:$0xff] }
   0x4   :  { %195 = vperm.xlu0 %1336, %v112_v4   ;;  %129 = vmatpush.msra.mxu0 %v92_v1  ;;  %v115_v10 = vld [vmem:[%s2177_s1 + $0x18] sm:$0xff]  ;;  %v113_v11 = vld [vmem:[%s2177_s1 + $0x8] sm:$0xff]  ;;  %v87_v12 = vld [vmem:[%s2176_s2 + $0x50] sm:$0xff] }
   0x5   :  { %410 = vmatpush.msra.mxu1 %v92_v1  ;;  %692 = vmatpush.msra.mxu2 %v91_v5  ;;  %v86_v13 = vld [vmem:[%s2176_s2 + $0x48] sm:$0xff]  ;;  %v85_v14 = vld [vmem:[%s2176_s2 + $0x40] sm:$0xff]  ;;  %v84_v15 = vld [vmem:[%s2176_s2 + $0x38] sm:$0xff] }
   0x6   :  { %130 = vmatpush.msra.mxu0 %v91_v5  ;;  %972 = vmatpush.msra.mxu3 %v92_v1  ;;  %v120_v16 = vld [vmem:[%s2177_s1 + $0x40] sm:$0xff]  ;;  %v119_v17 = vld [vmem:[%s2177_s1 + $0x38] sm:$0xff]  ;;  %v118_v18 = vld [vmem:[%s2177_s1 + $0x30] sm:$0xff] }
   0x7   :  { %411 = vmatpush.msra.mxu1 %v91_v5  ;;  %693 = vmatpush.msra.mxu2 %v90_v6  ;;  %v83_v19 = vld [vmem:[%s2176_s2 + $0x30] sm:$0xff]  ;;  %v82_v20 = vld [vmem:[%s2176_s2 + $0x28] sm:$0xff]  ;;  %v81_v21 = vld [vmem:[%s2176_s2 + $0x20] sm:$0xff] }
   0x8   :  { %131 = vmatpush.msra.mxu0 %v90_v6  ;;  %973 = vmatpush.msra.mxu3 %v91_v5  ;;  %v80_v22 = vld [vmem:[%s2176_s2 + $0x18] sm:$0xff]  ;;  %v122_v24 = vld [vmem:[%s2177_s1 + $0x50] sm:$0xff]  ;;  %v121_v25 = vld [vmem:[%s2177_s1 + $0x48] sm:$0xff] }
   0x9   :  { %412 = vmatpush.msra.mxu1 %v90_v6  ;;  %694 = vmatpush.msra.mxu2 %v89_v7  ;;  %v123_v23 = vld [vmem:[%s2177_s1 + $0x58] sm:$0xff]  ;;  %v79_v26 = vld [vmem:[%s2176_s2 + $0x10] sm:$0xff]  ;;  %v78_v27 = vld [vmem:[%s2176_s2 + $0x8] sm:$0xff] }
   0xa   :  { %132 = vmatpush.msra.mxu0 %v89_v7  ;;  %974 = vmatpush.msra.mxu3 %v90_v6  ;;  %v77_v28 = vld [vmem:[%s2176_s2] sm:$0xff]  ;;  %v126_v30 = vld [vmem:[%s2177_s1 + $0x70] sm:$0xff]  ;;  %v125_v31 = vld [vmem:[%s2177_s1 + $0x68] sm:$0xff] }
   0xb   :  { %413 = vmatpush.msra.mxu1 %v89_v7  ;;  %695 = vmatpush.msra.mxu2 %v88_v8  ;;  %v1270_v29 = vld [vmem:[%s2178_s0 + $0x100] sm:$0xff]  ;;  %v1271_v35 = vld [vmem:[%s2178_s0 + $0x108] sm:$0xff]  ;;  %v1256_v37 = vld [vmem:[%s2177_s1 + $0x90] sm:$0xff] }
   0xc   :  { %210 = vperm.xlu2 %1338, %v117_v9   ;;  %204 = vperm.xlu1 %1337, %v115_v10   ;;  %v124_v32 = vld [vmem:[%s2177_s1 + $0x60] sm:$0xff]  ;;  %v127_v38 = vld [vmem:[%s2177_s1 + $0x78] sm:$0xff]  ;;  %v1239_v39 = vld [vmem:[%s2178_s0 + $0x88] sm:$0xff] }
   0xd   :  { %198 = vperm.xlu0 %1336, %v113_v11   ;;  %133 = vmatpush.msra.mxu0 %v88_v8  ;;  %v96_v33 = vld [vmem:[%s2178_s0] sm:$0xff]  ;;  %v97_v40 = vld [vmem:[%s2178_s0 + $0x8] sm:$0xff]  ;;  %v1272_v41 = vld [vmem:[%s2178_s0 + $0x110] sm:$0xff] }
   0xe   :  { %414 = vmatpush.msra.mxu1 %v88_v8  ;;  %696 = vmatpush.msra.mxu2 %v87_v12  ;;  %v1238_v34 = vld [vmem:[%s2178_s0 + $0x80] sm:$0xff]  ;;  %v1257_v42 = vld [vmem:[%s2177_s1 + $0x98] sm:$0xff]  ;;  %v1259_v43 = vld [vmem:[%s2177_s1 + $0xa8] sm:$0xff] }
   0xf   :  { %134 = vmatpush.msra.mxu0 %v87_v12  ;;  %975 = vmatpush.msra.mxu3 %v89_v7  ;;  %v1254_v36 = vld [vmem:[%s2177_s1 + $0x80] sm:$0xff]  ;;  %v1255_v44 = vld [vmem:[%s2177_s1 + $0x88] sm:$0xff]  ;;  %v98_v45 = vld [vmem:[%s2178_s0 + $0x10] sm:$0xff] }
  0x10   :  { %415 = vmatpush.msra.mxu1 %v87_v12  ;;  %697 = vmatpush.msra.mxu2 %v86_v13  ;;  %v1240_v46 = vld [vmem:[%s2178_s0 + $0x90] sm:$0xff]  ;;  %v1273_v47 = vld [vmem:[%s2178_s0 + $0x118] sm:$0xff]  ;;  %v1262_v49 = vld [vmem:[%s2177_s1 + $0xc0] sm:$0xff] }
  0x11   :  { %135 = vmatpush.msra.mxu0 %v86_v13  ;;  %976 = vmatpush.msra.mxu3 %v88_v8  ;;  %v1260_v48 = vld [vmem:[%s2177_s1 + $0xb0] sm:$0xff]  ;;  %v1258_v50 = vld [vmem:[%s2177_s1 + $0xa0] sm:$0xff]  ;;  %v99_v51 = vld [vmem:[%s2178_s0 + $0x18] sm:$0xff] }
  0x12   :  { %416 = vmatpush.msra.mxu1 %v86_v13  ;;  %698 = vmatpush.msra.mxu2 %v85_v14  ;;  %v1241_v52 = vld [vmem:[%s2178_s0 + $0x98] sm:$0xff]  ;;  %v1302_v53 = vld [vmem:[%s2178_s0 + $0x180] sm:$0xff]  ;;  %v1263_v55 = vld [vmem:[%s2177_s1 + $0xc8] sm:$0xff] }
  0x13   :  { %136 = vmatpush.msra.mxu0 %v85_v14  ;;  %977 = vmatpush.msra.mxu3 %v87_v12  ;;  %v1274_v54 = vld [vmem:[%s2178_s0 + $0x120] sm:$0xff]  ;;  %v1265_v56 = vld [vmem:[%s2177_s1 + $0xd8] sm:$0xff]  ;;  %v1303_v60 = vld [vmem:[%s2178_s0 + $0x188] sm:$0xff] }
  0x14   :  { %417 = vmatpush.msra.mxu1 %v85_v14  ;;  %699 = vmatpush.msra.mxu2 %v84_v15  ;;  %v1261_v57 = vld [vmem:[%s2177_s1 + $0xb8] sm:$0xff]  ;;  %v100_v58 = vld [vmem:[%s2178_s0 + $0x20] sm:$0xff]  ;;  %v1275_v61 = vld [vmem:[%s2178_s0 + $0x128] sm:$0xff] }
  0x15   :  { %219 = vperm.xlu2 %1338, %v120_v16   ;;  %216 = vperm.xlu1 %1337, %v119_v17   ;;  %v1242_v59 = vld [vmem:[%s2178_s0 + $0xa0] sm:$0xff]  ;;  %v1268_v63 = vld [vmem:[%s2177_s1 + $0xf0] sm:$0xff]  ;;  %v101_v1 = vld [vmem:[%s2178_s0 + $0x28] sm:$0xff] }
  0x16   :  { %213 = vperm.xlu0 %1336, %v118_v18   ;;  %137 = vmatpush.msra.mxu0 %v84_v15  ;;  %v1266_v62 = vld [vmem:[%s2177_s1 + $0xe0] sm:$0xff]  ;;  %v1264_v0 = vld [vmem:[%s2177_s1 + $0xd0] sm:$0xff]  ;;  %v1243_v2 = vld [vmem:[%s2178_s0 + $0xa8] sm:$0xff] }
  0x17   :  { %418 = vmatpush.msra.mxu1 %v84_v15  ;;  %700 = vmatpush.msra.mxu2 %v83_v19  ;;  %v1304_v3 = vld [vmem:[%s2178_s0 + $0x190] sm:$0xff]  ;;  %v1269_v5 = vld [vmem:[%s2177_s1 + $0xf8] sm:$0xff]  ;;  %v1286_v6 = vld [vmem:[%s2177_s1 + $0x100] sm:$0xff] }
  0x18   :  { %138 = vmatpush.msra.mxu0 %v83_v19  ;;  %978 = vmatpush.msra.mxu3 %v86_v13  ;;  %v1276_v4 = vld [vmem:[%s2178_s0 + $0x130] sm:$0xff]  ;;  %v1267_v7 = vld [vmem:[%s2177_s1 + $0xe8] sm:$0xff]  ;;  %v1305_v10 = vld [vmem:[%s2178_s0 + $0x198] sm:$0xff] }
  0x19   :  { %419 = vmatpush.msra.mxu1 %v83_v19  ;;  %701 = vmatpush.msra.mxu2 %v82_v20  ;;  %v102_v8 = vld [vmem:[%s2178_s0 + $0x30] sm:$0xff]  ;;  %v1277_v11 = vld [vmem:[%s2178_s0 + $0x138] sm:$0xff]  ;;  %v1287_v12 = vld [vmem:[%s2177_s1 + $0x108] sm:$0xff] }
  0x1a   :  { %139 = vmatpush.msra.mxu0 %v82_v20  ;;  %979 = vmatpush.msra.mxu3 %v85_v14  ;;  %v1244_v9 = vld [vmem:[%s2178_s0 + $0xb0] sm:$0xff]  ;;  %v1289_v13 = vld [vmem:[%s2177_s1 + $0x118] sm:$0xff]  ;;  %v1306_v18 = vld [vmem:[%s2178_s0 + $0x1a0] sm:$0xff] }
  0x1b   :  { %420 = vmatpush.msra.mxu1 %v82_v20  ;;  %702 = vmatpush.msra.mxu2 %v81_v21  ;;  %v1288_v14 = vld [vmem:[%s2177_s1 + $0x110] sm:$0xff]  ;;  %v103_v16 = vld [vmem:[%s2178_s0 + $0x38] sm:$0xff] }
  0x1c   :  { %140 = vmatpush.msra.mxu0 %v81_v21  ;;  %980 = vmatpush.msra.mxu3 %v84_v15  ;;  %v1245_v17 = vld [vmem:[%s2178_s0 + $0xb8] sm:$0xff] }
  0x1d   :  { %421 = vmatpush.msra.mxu1 %v81_v21  ;;  %703 = vmatpush.msra.mxu2 %v80_v22 }
  0x1e   :  { %228 = vperm.xlu2 %1338, %v123_v23   ;;  %225 = vperm.xlu1 %1337, %v122_v24   ;;  %v104_v23 = vld [vmem:[%s2178_s0 + $0x40] sm:$0xff] }
  0x1f   :  { %222 = vperm.xlu0 %1336, %v121_v25   ;;  %141 = vmatpush.msra.mxu0 %v80_v22  ;;  %v1246_v24 = vld [vmem:[%s2178_s0 + $0xc0] sm:$0xff]  ;;  %v1307_v25 = vld [vmem:[%s2178_s0 + $0x1a8] sm:$0xff] }
  0x20   :  { %422 = vmatpush.msra.mxu1 %v80_v22  ;;  %704 = vmatpush.msra.mxu2 %v79_v26 }
  0x21   :  { %142 = vmatpush.msra.mxu0 %v79_v26  ;;  %981 = vmatpush.msra.mxu3 %v83_v19  ;;  %v1278_v19 = vld [vmem:[%s2178_s0 + $0x140] sm:$0xff] }
  0x22   :  { %423 = vmatpush.msra.mxu1 %v79_v26  ;;  %705 = vmatpush.msra.mxu2 %v78_v27 }
  0x23   :  { %143 = vmatpush.msra.mxu0 %v78_v27  ;;  %982 = vmatpush.msra.mxu3 %v82_v20  ;;  %v1290_v20 = vld [vmem:[%s2177_s1 + $0x120] sm:$0xff] }
  0x24   :  { %424 = vmatpush.msra.mxu1 %v78_v27  ;;  %706 = vmatpush.msra.mxu2 %v77_v28 }
  0x25   :  { %144 = vmatpush.msra.mxu0 %v77_v28  ;;  %707 = vmatmul.f32.vlgmr.msra.gmra.mxu2 %v1270_v29  ;;  %v1295_v29 = vld [vmem:[%s2177_s1 + $0x148] sm:$0xff] }
  0x26   :  { %425 = vmatpush.msra.mxu1 %v77_v28  ;;  %237 = vperm.xlu2 %1338, %v126_v30   ;;  %v1294_v30 = vld [vmem:[%s2177_s1 + $0x140] sm:$0xff] }
  0x27   :  { %234 = vperm.xlu1 %1337, %v125_v31   ;;  %231 = vperm.xlu0 %1336, %v124_v32   ;;  %v105_v31 = vld [vmem:[%s2178_s0 + $0x48] sm:$0xff] }
  0x28   :  { %145 = vmatmul.f32.vlgmr.msra.gmra.mxu0 %v96_v33  ;;  %426 = vmatmul.f32.vlgmr.msra.gmra.mxu1 %v1238_v34  ;;  %v1247_v32 = vld [vmem:[%s2178_s0 + $0xc8] sm:$0xff]  ;;  %v1308_v33 = vld [vmem:[%s2178_s0 + $0x1b0] sm:$0xff] }
  0x29   :  { %983 = vmatpush.msra.mxu3 %v81_v21  ;;  %v1292_v21 = vld [vmem:[%s2177_s1 + $0x130] sm:$0xff] }
  0x2b   :  { %984 = vmatpush.msra.mxu3 %v80_v22  ;;  %v1291_v22 = vld [vmem:[%s2177_s1 + $0x128] sm:$0xff] }
  0x2d   :  { %710 = vmatmul.f32.gmra.mxu2 %v1271_v35  ;;  %985 = vmatpush.msra.mxu3 %v79_v26  ;;  %v1280_v35 = vld [vmem:[%s2178_s0 + $0x150] sm:$0xff] }
  0x2e   :  { %476 = vperm.xlu2 %1338, %v1254_v36   ;;  %v1296_v36 = vld [vmem:[%s2177_s1 + $0x150] sm:$0xff] }
  0x2f   :  { %482 = vperm.xlu1 %1337, %v1256_v37   ;;  %240 = vperm.xlu0 %1336, %v127_v38   ;;  %v1298_v37 = vld [vmem:[%s2177_s1 + $0x160] sm:$0xff]  ;;  %v1297_v38 = vld [vmem:[%s2177_s1 + $0x158] sm:$0xff] }
  0x30   :  { %429 = vmatmul.f32.gmra.mxu1 %v1239_v39  ;;  %148 = vmatmul.f32.gmra.mxu0 %v97_v40  ;;  %v106_v40 = vld [vmem:[%s2178_s0 + $0x50] sm:$0xff] }
  0x31   :  { %986 = vmatpush.msra.mxu3 %v78_v27  ;;  %v1279_v27 = vld [vmem:[%s2178_s0 + $0x148] sm:$0xff] }
  0x33   :  { %987 = vmatpush.msra.mxu3 %v77_v28  ;;  %v1293_v28 = vld [vmem:[%s2177_s1 + $0x138] sm:$0xff] }
  0x34   :  { %988 = vmatmul.f32.vlgmr.msra.gmra.mxu3 %v1302_v53 }
  0x35   :  { %713 = vmatmul.f32.gmra.mxu2 %v1272_v41  ;;  %v1248_v41 = vld [vmem:[%s2178_s0 + $0xd0] sm:$0xff] }
  0x36   :  { %485 = vperm.xlu2 %1338, %v1257_v42   ;;  %v1309_v42 = vld [vmem:[%s2178_s0 + $0x1b8] sm:$0xff] }
  0x37   :  { %491 = vperm.xlu1 %1337, %v1259_v43   ;;  %479 = vperm.xlu0 %1336, %v1255_v44  }
  0x38   :  { %151 = vmatmul.f32.gmra.mxu0 %v98_v45  ;;  %432 = vmatmul.f32.gmra.mxu1 %v1240_v46  ;;  %v1281_v45 = vld [vmem:[%s2178_s0 + $0x158] sm:$0xff]  ;;  %v1299_v46 = vld [vmem:[%s2177_s1 + $0x168] sm:$0xff] }
  0x3c   :  { %991 = vmatmul.f32.gmra.mxu3 %v1303_v60  ;;  %v1250_v60 = vld [vmem:[%s2178_s0 + $0xe0] sm:$0xff] }
  0x3d   :  { %716 = vmatmul.f32.gmra.mxu2 %v1273_v47  ;;  %v1301_v47 = vld [vmem:[%s2177_s1 + $0x178] sm:$0xff] }
  0x3e   :  { %494 = vperm.xlu2 %1338, %v1260_v48   ;;  %v1300_v48 = vld [vmem:[%s2177_s1 + $0x170] sm:$0xff] }
  0x3f   :  { %500 = vperm.xlu1 %1337, %v1262_v49   ;;  %488 = vperm.xlu0 %1336, %v1258_v50   ;;  %v107_v49 = vld [vmem:[%s2178_s0 + $0x58] sm:$0xff] }
  0x40   :  { %154 = vmatmul.f32.gmra.mxu0 %v99_v51  ;;  %435 = vmatmul.f32.gmra.mxu1 %v1241_v52  ;;  %v1249_v50 = vld [vmem:[%s2178_s0 + $0xd8] sm:$0xff]  ;;  %v1310_v51 = vld [vmem:[%s2178_s0 + $0x1c0] sm:$0xff] }
  0x44   :  { %994 = vmatmul.f32.gmra.mxu3 %v1304_v3  ;;  %v1322_v3 = vld [vmem:[%s2177_s1 + $0x1a0] sm:$0xff] }
  0x45   :  { %719 = vmatmul.f32.gmra.mxu2 %v1274_v54 }
  0x46   :  { %503 = vperm.xlu2 %1338, %v1263_v55   ;;  %v1282_v55 = vld [vmem:[%s2178_s0 + $0x160] sm:$0xff] }
  0x47   :  { %509 = vperm.xlu1 %1337, %v1265_v56   ;;  %497 = vperm.xlu0 %1336, %v1261_v57   ;;  %v1320_v56 = vld [vmem:[%s2177_s1 + $0x190] sm:$0xff]  ;;  %v1319_v57 = vld [vmem:[%s2177_s1 + $0x188] sm:$0xff] }
  0x48   :  { %157 = vmatmul.f32.gmra.mxu0 %v100_v58  ;;  %438 = vmatmul.f32.gmra.mxu1 %v1242_v59  ;;  %v1318_v58 = vld [vmem:[%s2177_s1 + $0x180] sm:$0xff] }
  0x49   :  { %v108_v59 = vld [vmem:[%s2178_s0 + $0x60] sm:$0xff] }
  0x4c   :  { %997 = vmatmul.f32.gmra.mxu3 %v1305_v10 }
  0x4d   :  { %722 = vmatmul.f32.gmra.mxu2 %v1275_v61  ;;  %v1311_v61 = vld [vmem:[%s2178_s0 + $0x1c8] sm:$0xff] }
  0x4e   :  { %512 = vperm.xlu2 %1338, %v1266_v62  }
  0x4f   :  { %518 = vperm.xlu1 %1337, %v1268_v63   ;;  %506 = vperm.xlu0 %1336, %v1264_v0  }
  0x50   :  { %160 = vmatmul.f32.gmra.mxu0 %v101_v1  ;;  %441 = vmatmul.f32.gmra.mxu1 %v1243_v2  ;;  %v1283_v1 = vld [vmem:[%s2178_s0 + $0x168] sm:$0xff] }
  0x51   :  { %v1323_v2 = vld [vmem:[%s2177_s1 + $0x1a8] sm:$0xff] }
  0x54   :  { %1000 = vmatmul.f32.gmra.mxu3 %v1306_v18  ;;  %v1313_v18 = vld [vmem:[%s2178_s0 + $0x1d8] sm:$0xff] }
  0x55   :  { %725 = vmatmul.f32.gmra.mxu2 %v1276_v4  ;;  %v1321_v4 = vld [vmem:[%s2177_s1 + $0x198] sm:$0xff] }
  0x56   :  { %521 = vperm.xlu2 %1338, %v1269_v5   ;;  %v109_v5 = vld [vmem:[%s2178_s0 + $0x68] sm:$0xff] }
  0x57   :  { %757 = vperm.xlu1 %1337, %v1286_v6   ;;  %515 = vperm.xlu0 %1336, %v1267_v7   ;;  %v1251_v6 = vld [vmem:[%s2178_s0 + $0xe8] sm:$0xff]  ;;  %v1312_v7 = vld [vmem:[%s2178_s0 + $0x1d0] sm:$0xff] }
  0x58   :  { %163 = vmatmul.f32.gmra.mxu0 %v102_v8  ;;  %444 = vmatmul.f32.gmra.mxu1 %v1244_v9 }
  0x5c   :  { %1003 = vmatmul.f32.gmra.mxu3 %v1307_v25  ;;  %v1327_v25 = vld [vmem:[%s2177_s1 + $0x1c8] sm:$0xff] }
  0x5d   :  { %728 = vmatmul.f32.gmra.mxu2 %v1277_v11  ;;  %v1600_v15 = vpop.permute.xlu2 %207  ;;  %v1284_v11 = vld [vmem:[%s2178_s0 + $0x170] sm:$0xff] }
  0x5e   :  { %760 = vperm.xlu2 %1338, %v1287_v12   ;;  %v1326_v12 = vld [vmem:[%s2177_s1 + $0x1c0] sm:$0xff] }
  0x5f   :  { %766 = vperm.xlu1 %1337, %v1289_v13   ;;  %763 = vperm.xlu0 %1336, %v1288_v14   ;;  %v1325_v13 = vld [vmem:[%s2177_s1 + $0x1b8] sm:$0xff]  ;;  %v1324_v14 = vld [vmem:[%s2177_s1 + $0x1b0] sm:$0xff] }
  0x60   :  { %166 = vmatmul.f32.gmra.mxu0 %v103_v16  ;;  %447 = vmatmul.f32.gmra.mxu1 %v1245_v17  ;;  %v110_v16 = vld [vmem:[%s2178_s0 + $0x70] sm:$0xff] }
  0x61   :  { %v1252_v17 = vld [vmem:[%s2178_s0 + $0xf0] sm:$0xff] }
  0x64   :  { %1006 = vmatmul.f32.gmra.mxu3 %v1308_v33  ;;  %v1822_v33 = vstv %s2179_s3 }
  0x65   :  { %731 = vmatmul.f32.gmra.mxu2 %v1278_v19 }
  0x66   :  { %769 = vperm.xlu2 %1338, %v1290_v20   ;;  %v1632_v26 = vpop.permute.xlu2 %210 }
  0x67   :  { %775 = vperm.xlu1 %1337, %v1292_v21   ;;  %772 = vperm.xlu0 %1336, %v1291_v22   ;;  %v1285_v22 = vld [vmem:[%s2178_s0 + $0x178] sm:$0xff] }
  0x68   :  { %169 = vmatmul.f32.gmra.mxu0 %v104_v23  ;;  %450 = vmatmul.f32.gmra.mxu1 %v1246_v24  ;;  %v1329_v23 = vld [vmem:[%s2177_s1 + $0x1d8] sm:$0xff]  ;;  %v1328_v24 = vld [vmem:[%s2177_s1 + $0x1d0] sm:$0xff] }
  0x6c   :  { %1009 = vmatmul.f32.gmra.mxu3 %v1309_v42 }
  0x6d   :  { %734 = vmatmul.f32.gmra.mxu2 %v1279_v27  ;;  %v111_v27 = vld [vmem:[%s2178_s0 + $0x78] sm:$0xff] }
  0x6e   :  { %778 = vperm.xlu2 %1338, %v1293_v28   ;;  %v1253_v28 = vld [vmem:[%s2178_s0 + $0xf8] sm:$0xff] }
  0x6f   :  { %784 = vperm.xlu1 %1337, %v1295_v29   ;;  %781 = vperm.xlu0 %1336, %v1294_v30   ;;  %v1655_v34 = vpop.permute.xlu2 %219  ;;  %v1314_v29 = vld [vmem:[%s2178_s0 + $0x1e0] sm:$0xff] }
  0x70   :  { %172 = vmatmul.f32.gmra.mxu0 %v105_v31  ;;  %453 = vmatmul.f32.gmra.mxu1 %v1247_v32 }
  0x74   :  { %1012 = vmatmul.f32.gmra.mxu3 %v1310_v51  ;;  %v1316_v51 = vld [vmem:[%s2178_s0 + $0x1f0] sm:$0xff] }
  0x75   :  { %737 = vmatmul.f32.gmra.mxu2 %v1280_v35  ;;  %v1669_v39 = vpop.permute.xlu1 %201 }
  0x76   :  { %787 = vperm.xlu2 %1338, %v1296_v36   ;;  %v1680_v43 = vpop.permute.xlu0 %195 }
  0x77   :  { %793 = vperm.xlu1 %1337, %v1298_v37   ;;  %790 = vperm.xlu0 %1336, %v1297_v38  }
  0x78   :  { %v1682_v44 = vpop.permute.xlu2 %228  ;;  %175 = vmatmul.f32.gmra.mxu0 %v106_v40  ;;  %456 = vmatmul.f32.gmra.mxu1 %v1248_v41  ;;  %v1315_v40 = vld [vmem:[%s2178_s0 + $0x1e8] sm:$0xff] }
  0x7c   :  { %1015 = vmatmul.f32.gmra.mxu3 %v1311_v61 }
  0x7d   :  { %740 = vmatmul.f32.gmra.mxu2 %v1281_v45 }
  0x7e   :  { %796 = vperm.xlu2 %1338, %v1299_v46   ;;  %v1705_v52 = vpop.permute.xlu1 %204 }
  0x7f   :  { %802 = vperm.xlu1 %1337, %v1301_v47   ;;  %799 = vperm.xlu0 %1336, %v1300_v48   ;;  %v1707_v53 = vpop.permute.xlu0 %198 }
  0x80   :  { %v1709_v54 = vpop.permute.xlu2 %237  ;;  %178 = vmatmul.f32.gmra.mxu0 %v107_v49  ;;  %459 = vmatmul.f32.gmra.mxu1 %v1249_v50 }
  0x81   :  { %2181 = vst [vmem:[#allocation3_spill] sm:$0xff] %v1709_v54 }
  0x84   :  { %1018 = vmatmul.f32.gmra.mxu3 %v1312_v7 }
  0x85   :  { %743 = vmatmul.f32.gmra.mxu2 %v1282_v55 }
  0x86   :  { %1044 = vperm.xlu2 %1338, %v1320_v56  }
  0x87   :  { %1041 = vperm.xlu1 %1337, %v1319_v57   ;;  %1038 = vperm.xlu0 %1336, %v1318_v58   ;;  %v1732_v62 = vpop.permute.xlu1 %216 }
  0x88   :  { %v1734_v63 = vpop.permute.xlu2 %476  ;;  %v1736_v0 = vpop.permute.xlu0 %213  ;;  %181 = vmatmul.f32.gmra.mxu0 %v108_v59  ;;  %462 = vmatmul.f32.gmra.mxu1 %v1250_v60 }
  0x8c   :  { %1021 = vmatmul.f32.gmra.mxu3 %v1313_v18 }
  0x8d   :  { %746 = vmatmul.f32.gmra.mxu2 %v1283_v1 }
  0x8e   :  { %1053 = vperm.xlu2 %1338, %v1323_v2   ;;  %v1317_v2 = vld [vmem:[%s2178_s0 + $0x1f8] sm:$0xff] }
  0x8f   :  { %1050 = vperm.xlu1 %1337, %v1322_v3   ;;  %1047 = vperm.xlu0 %1336, %v1321_v4  }
  0x90   :  { %v1759_v8 = vpop.permute.xlu2 %485  ;;  %v1761_v9 = vpop.permute.xlu1 %225  ;;  %184 = vmatmul.f32.gmra.mxu0 %v109_v5  ;;  %465 = vmatmul.f32.gmra.mxu1 %v1251_v6 }
  0x91   :  { %v1763_v10 = vpop.permute.xlu0 %222 }
  0x94   :  { %1024 = vmatmul.f32.gmra.mxu3 %v1314_v29 }
  0x95   :  { %749 = vmatmul.f32.gmra.mxu2 %v1284_v11 }
  0x96   :  { %1062 = vperm.xlu2 %1338, %v1326_v12  }
  0x97   :  { %1059 = vperm.xlu1 %1337, %v1325_v13   ;;  %1056 = vperm.xlu0 %1336, %v1324_v14  }
  0x98   :  { %v1786_v19 = vpop.permute.xlu2 %494  ;;  %187 = vmatmul.f32.gmra.mxu0 %v110_v16  ;;  %468 = vmatmul.f32.gmra.mxu1 %v1252_v17 }
  0x99   :  { %v1788_v20 = vpop.permute.xlu1 %234  ;;  %v1790_v21 = vpop.permute.xlu0 %231 }
  0x9a   :  { %2182 = vst [vmem:[#allocation4_spill] sm:$0xff] %v1788_v20 }
  0x9b   :  { %2183 = vst [vmem:[#allocation5_spill] sm:$0xff] %v1790_v21 }
  0x9c   :  { %1027 = vmatmul.f32.gmra.mxu3 %v1315_v40 }
  0x9d   :  { %752 = vmatmul.f32.gmra.mxu2 %v1285_v22 }
  0x9e   :  { %1071 = vperm.xlu2 %1338, %v1329_v23  }
  0x9f   :  { %1068 = vperm.xlu1 %1337, %v1328_v24   ;;  %1065 = vperm.xlu0 %1336, %v1327_v25  }
  0xa0   :  { %v1813_v30 = vpop.permute.xlu2 %503  ;;  %190 = vmatmul.f32.gmra.mxu0 %v111_v27  ;;  %471 = vmatmul.f32.gmra.mxu1 %v1253_v28 }
  0xa1   :  { %v1815_v31 = vpop.permute.xlu1 %482  ;;  %v1817_v32 = vpop.permute.xlu0 %240 }
  0xa2   :  { %2184 = vst [vmem:[#allocation6_spill] sm:$0xff] %v1817_v32 }
  0xa4   :  { %1030 = vmatmul.f32.gmra.mxu3 %v1316_v51 }
  0xa5   :  { %v146_v35 = vpop.f32.mrf.mxu0  ;;  %v427_v36 = vpop.f32.mrf.mxu1 }
  0xa6   :  { %v147_v37 = vadd.f32 %v146_v35, %v1822_v33  ;;  %v428_v38 = vadd.f32 %v427_v36, %v1822_v33 }
  0xa8   :  { %541 = vperm.xlu0 %1336, %v428_v38   ;;  %260 = vperm.xlu1 %1337, %v147_v37   ;;  %v1829_v41 = vpop.permute.xlu2 %512  ;;  %v708_v42 = vpop.f32.mrf.mxu2 }
  0xa9   :  { %v1831_v45 = vpop.permute.xlu1 %491  ;;  %v1833_v46 = vpop.permute.xlu0 %479  ;;  %v709_v47 = vadd.f32 %v708_v42, %v1822_v33 }
  0xab   :  { %822 = vperm.xlu2 %1338, %v709_v47  }
  0xac   :  { %1033 = vmatmul.f32.gmra.mxu3 %v1317_v2 }
  0xad   :  { %v430_v48 = vpop.f32.mrf.mxu1  ;;  %v149_v49 = vpop.f32.mrf.mxu0 }
  0xae   :  { %v431_v50 = vadd.f32 %v430_v48, %v1822_v33  ;;  %v150_v55 = vadd.f32 %v149_v49, %v1822_v33 }
  0xb0   :  { %546 = vperm.xlu1 %1337, %v431_v50   ;;  %v1841_v56 = vpop.permute.xlu2 %521  ;;  %v711_v57 = vpop.f32.mrf.mxu2 }
  0xb1   :  { %2185 = vst [vmem:[#allocation7_spill] sm:$0xff] %v1841_v56  ;;  %v1843_v58 = vpop.permute.xlu1 %500  ;;  %v1845_v59 = vpop.permute.xlu0 %488  ;;  %v712_v60 = vadd.f32 %v711_v57, %v1822_v33 }
  0xb3   :  { %827 = vperm.xlu0 %1336, %v712_v60   ;;  %265 = vperm.xlu2 %1338, %v150_v55  }
  0xb5   :  { %v152_v61 = vpop.f32.mrf.mxu0  ;;  %v433_v1 = vpop.f32.mrf.mxu1 }
  0xb6   :  { %v153_v3 = vadd.f32 %v152_v61, %v1822_v33  ;;  %v434_v4 = vadd.f32 %v433_v1, %v1822_v33 }
  0xb7   :  { %v1869_v27 = vpop.f32.mrf.mxu3 }
  0xb8   :  { %v1853_v5 = vpop.permute.xlu2 %760  ;;  %v714_v6 = vpop.f32.mrf.mxu2 }
  0xb9   :  { %v1855_v7 = vpop.permute.xlu1 %509  ;;  %v1857_v11 = vpop.permute.xlu0 %497  ;;  %v715_v12 = vadd.f32 %v714_v6, %v1822_v33 }
  0xbb   :  { %270 = vperm.xlu0 %1336, %v153_v3   ;;  %551 = vperm.xlu2 %1338, %v434_v4  }
  0xbc   :  { %832 = vperm.xlu1 %1337, %v715_v12  }
  0xbd   :  { %v155_v13 = vpop.f32.mrf.mxu0  ;;  %v436_v14 = vpop.f32.mrf.mxu1 }
  0xbe   :  { %v437_v16 = vadd.f32 %v436_v14, %v1822_v33  ;;  %v156_v18 = vadd.f32 %v155_v13, %v1822_v33 }
  0xbf   :  { %v1880_v48 = vpop.f32.mrf.mxu3 }
  0xc0   :  { %v1861_v17 = vpop.permute.xlu2 %769  ;;  %v717_v22 = vpop.f32.mrf.mxu2 }
  0xc1   :  { %v1864_v23 = vpop.permute.xlu1 %518  ;;  %v1866_v24 = vpop.permute.xlu0 %506  ;;  %v718_v25 = vadd.f32 %v717_v22, %v1822_v33 }
  0xc2   :  { %2186 = vst [vmem:[#allocation8_spill] sm:$0xff] %v1864_v23 }
  0xc3   :  { %556 = vperm.xlu0 %1336, %v437_v16   ;;  %837 = vperm.xlu2 %1338, %v718_v25  }
  0xc4   :  { %275 = vperm.xlu1 %1337, %v156_v18  }
  0xc5   :  { %v158_v28 = vpop.f32.mrf.mxu0  ;;  %v439_v29 = vpop.f32.mrf.mxu1 }
  0xc6   :  { %v159_v35 = vadd.f32 %v158_v28, %v1822_v33  ;;  %v440_v37 = vadd.f32 %v439_v29, %v1822_v33 }
  0xc7   :  { %v1891_v3 = vpop.f32.mrf.mxu3 }
  0xc8   :  { %v1872_v36 = vpop.permute.xlu2 %778  ;;  %v720_v38 = vpop.f32.mrf.mxu2 }
  0xc9   :  { %v1875_v40 = vpop.permute.xlu1 %757  ;;  %v1877_v42 = vpop.permute.xlu0 %515  ;;  %v721_v47 = vadd.f32 %v720_v38, %v1822_v33 }
  0xca   :  { %2187 = vst [vmem:[#allocation9_spill] sm:$0xff] %v1877_v42 }
  0xcb   :  { %842 = vperm.xlu0 %1336, %v721_v47   ;;  %280 = vperm.xlu2 %1338, %v159_v35  }
  0xcc   :  { %561 = vperm.xlu1 %1337, %v440_v37  }
  0xcd   :  { %v161_v49 = vpop.f32.mrf.mxu0  ;;  %v442_v50 = vpop.f32.mrf.mxu1 }
  0xce   :  { %v162_v51 = vadd.f32 %v161_v49, %v1822_v33  ;;  %v443_v55 = vadd.f32 %v442_v50, %v1822_v33 }
  0xcf   :  { %v1902_v28 = vpop.f32.mrf.mxu3 }
  0xd0   :  { %v1884_v57 = vpop.permute.xlu2 %787  ;;  %v723_v60 = vpop.f32.mrf.mxu2 }
  0xd1   :  { %v1886_v61 = vpop.permute.xlu1 %766  ;;  %v1888_v1 = vpop.permute.xlu0 %763  ;;  %v724_v2 = vadd.f32 %v723_v60, %v1822_v33 }
  0xd3   :  { %285 = vperm.xlu0 %1336, %v162_v51   ;;  %566 = vperm.xlu2 %1338, %v443_v55  }
  0xd4   :  { %847 = vperm.xlu1 %1337, %v724_v2  }
  0xd5   :  { %v164_v4 = vpop.f32.mrf.mxu0  ;;  %v445_v6 = vpop.f32.mrf.mxu1 }
  0xd6   :  { %v446_v12 = vadd.f32 %v445_v6, %v1822_v33  ;;  %v165_v14 = vadd.f32 %v164_v4, %v1822_v33 }
  0xd7   :  { %v1913_v4 = vpop.f32.mrf.mxu3 }
  0xd8   :  { %v1894_v13 = vpop.permute.xlu2 %796  ;;  %v726_v16 = vpop.f32.mrf.mxu2 }
  0xd9   :  { %2188 = vst [vmem:[#allocation10_spill] sm:$0xff] %v1894_v13  ;;  %v1897_v18 = vpop.permute.xlu1 %775  ;;  %v1899_v22 = vpop.permute.xlu0 %772  ;;  %v727_v25 = vadd.f32 %v726_v16, %v1822_v33 }
  0xdb   :  { %571 = vperm.xlu0 %1336, %v446_v12   ;;  %852 = vperm.xlu2 %1338, %v727_v25  }
  0xdc   :  { %290 = vperm.xlu1 %1337, %v165_v14  }
  0xdd   :  { %v167_v29 = vpop.f32.mrf.mxu0  ;;  %v448_v35 = vpop.f32.mrf.mxu1 }
  0xde   :  { %v168_v37 = vadd.f32 %v167_v29, %v1822_v33  ;;  %v449_v47 = vadd.f32 %v448_v35, %v1822_v33 }
  0xe0   :  { %v1905_v38 = vpop.permute.xlu2 %1044  ;;  %v729_v49 = vpop.f32.mrf.mxu2 }
  0xe1   :  { %2189 = vst [vmem:[#allocation11_spill] sm:$0xff] %v1905_v38  ;;  %v1908_v50 = vpop.permute.xlu1 %784  ;;  %v1910_v51 = vpop.permute.xlu0 %781  ;;  %v730_v55 = vadd.f32 %v729_v49, %v1822_v33 }
  0xe3   :  { %857 = vperm.xlu0 %1336, %v730_v55   ;;  %295 = vperm.xlu2 %1338, %v168_v37  }
  0xe4   :  { %576 = vperm.xlu1 %1337, %v449_v47  }
  0xe5   :  { %v170_v60 = vpop.f32.mrf.mxu0  ;;  %v451_v2 = vpop.f32.mrf.mxu1 }
  0xe6   :  { %v171_v6 = vadd.f32 %v170_v60, %v1822_v33  ;;  %v452_v12 = vadd.f32 %v451_v2, %v1822_v33  ;;  %v1926_v2 = vpop.f32.mrf.mxu3 }
  0xe8   :  { %v1917_v14 = vpop.permute.xlu2 %1053  ;;  %v732_v16 = vpop.f32.mrf.mxu2 }
  0xe9   :  { %2190 = vst [vmem:[#allocation12_spill] sm:$0xff] %v1917_v14  ;;  %v1919_v25 = vpop.permute.xlu1 %793  ;;  %v1921_v29 = vpop.permute.xlu0 %790  ;;  %v733_v35 = vadd.f32 %v732_v16, %v1822_v33 }
  0xeb   :  { %300 = vperm.xlu0 %1336, %v171_v6   ;;  %581 = vperm.xlu2 %1338, %v452_v12  }
  0xec   :  { %862 = vperm.xlu1 %1337, %v733_v35  }
  0xed   :  { %v173_v37 = vpop.f32.mrf.mxu0  ;;  %v454_v47 = vpop.f32.mrf.mxu1 }
  0xee   :  { %v455_v49 = vadd.f32 %v454_v47, %v1822_v33  ;;  %v174_v55 = vadd.f32 %v173_v37, %v1822_v33 }
  0xf0   :  { %v735_v60 = vpop.f32.mrf.mxu2  ;;  %v1933_v56 = vpop.permute.xlu2 %1062 }
  0xf1   :  { %v1928_v14 = vpop.permute.xlu1 %802  ;;  %v1930_v38 = vpop.permute.xlu0 %799  ;;  %v736_v32 = vadd.f32 %v735_v60, %v1822_v33  ;;  %2193 = vst [vmem:[#allocation15_spill] sm:$0xff] %v1933_v56  ;;  %v94_v60 = vlaneseq }
  0xf2   :  { %2191 = vst [vmem:[#allocation13_spill] sm:$0xff] %v1928_v14 }
  0xf3   :  { %2192 = vst [vmem:[#allocation14_spill] sm:$0xff] %v1930_v38  ;;  %586 = vperm.xlu0 %1336, %v455_v49   ;;  %867 = vperm.xlu2 %1338, %v736_v32   ;;  %v1942_v38 = vpop.f32.mrf.mxu3  ;;  %v1953_v23 = vand.u32 127, %v94_v60 }
  0xf4   :  { %305 = vperm.xlu1 %1337, %v174_v55  }
  0xf5   :  { %v176_v6 = vpop.f32.mrf.mxu0  ;;  %v457_v12 = vpop.f32.mrf.mxu1  ;;  %vm804_vm0 = vcmp.eq.s32.totalorder %v1953_v23, %v1875_v40  ;;  %vm243_vm1 = vcmp.eq.s32.totalorder %v1953_v23, %v1707_v53  ;;  %vm525_vm2 = vcmp.eq.s32.totalorder %v1953_v23, %v1815_v31  ;;  %vm242_vm3 = vcmp.eq.s32.totalorder %v1953_v23, %v1680_v43 }
  0xf6   :  { %v177_v16 = vadd.f32 %v176_v6, %v1822_v33  ;;  %v458_v35 = vadd.f32 %v457_v12, %v1822_v33  ;;  %vm523_vm4 = vcmp.eq.s32.totalorder %v1953_v23, %v1734_v63  ;;  %vm807_vm5 = vcmp.eq.s32.totalorder %v1953_v23, %v1886_v61 }
  0xf7   :  { %vm524_vm6 = vcmp.eq.s32.totalorder %v1953_v23, %v1833_v46  ;;  %vm246_vm7 = vcmp.eq.s32.totalorder %v1953_v23, %v1600_v15  ;;  %vm805_vm8 = vcmp.eq.s32.totalorder %v1953_v23, %v1853_v5  ;;  %v1331_v15 = vld [vmem:[%s2177_s1 + $0x1e8] sm:$0xff]  ;;  %vm244_vm9 = vcmp.eq.s32.totalorder %v1953_v23, %v1669_v39 }
  0xf8   :  { %v738_v37 = vpop.f32.mrf.mxu2  ;;  %v1944_v49 = vpop.permute.xlu2 %1071  ;;  %vm528_vm10 = vcmp.eq.s32.totalorder %v1953_v23, %v1831_v45  ;;  %vm806_vm11 = vcmp.eq.s32.totalorder %v1953_v23, %v1888_v1  ;;  %v993_v39 = vadd.f32 %v1880_v48, %v1822_v33  ;;  %v990_v45 = vadd.f32 %v1869_v27, %v1822_v33 }
  0xf9   :  { %v1937_v47 = vpop.permute.xlu1 %1041  ;;  %v1939_v54 = vpop.permute.xlu0 %1038  ;;  %v739_v14 = vadd.f32 %v738_v37, %v1822_v33  ;;  %2196 = vst [vmem:[#allocation18_spill] sm:$0xff] %v1944_v49  ;;  %vm526_vm12 = vcmp.eq.s32.totalorder %v1953_v23, %v1759_v8  ;;  %vm810_vm13 = vcmp.eq.s32.totalorder %v1953_v23, %v1897_v18  ;;  %vm245_vm14 = vcmp.eq.s32.totalorder %v1953_v23, %v1705_v52 }
  0xfa   :  { %2194 = vst [vmem:[#allocation16_spill] sm:$0xff] %v1937_v47  ;;  %v1002_v8 = vadd.f32 %v1913_v4, %v1822_v33  ;;  %v999_v18 = vadd.f32 %v1902_v28, %v1822_v33  ;;  %vm249_vm15 = vcmp.eq.s32.totalorder %v1953_v23, %v1732_v62 }
  0xfb   :  { %2195 = vst [vmem:[#allocation17_spill] sm:$0xff] %v1939_v54  ;;  %872 = vperm.xlu0 %1336, %v739_v14   ;;  %310 = vperm.xlu2 %1338, %v177_v16   ;;  %v1955_v14 = vpop.f32.mrf.mxu3 }
  0xfc   :  { %591 = vperm.xlu1 %1337, %v458_v35   ;;  %v1011_v62 = vadd.f32 %v1955_v14, %v1822_v33 }
  0xfd   :  { %v179_v32 = vpop.f32.mrf.mxu0  ;;  %v460_v55 = vpop.f32.mrf.mxu1 }
  0xfe   :  { %v180_v6 = vadd.f32 %v179_v32, %v1822_v33  ;;  %v461_v12 = vadd.f32 %v460_v55, %v1822_v33 }
 0x100   :  { %v741_v56 = vpop.f32.mrf.mxu2 }
 0x101   :  { %v1948_v47 = vpop.permute.xlu1 %1050  ;;  %v1950_v54 = vpop.permute.xlu0 %1047  ;;  %v742_v37 = vadd.f32 %v741_v56, %v1822_v33 }
 0x102   :  { %2197 = vst [vmem:[#allocation19_spill] sm:$0xff] %v1948_v47 }
 0x103   :  { %2198 = vst [vmem:[#allocation20_spill] sm:$0xff] %v1950_v54  ;;  %315 = vperm.xlu0 %1336, %v180_v6   ;;  %596 = vperm.xlu2 %1338, %v461_v12  }
 0x104   :  { %877 = vperm.xlu1 %1337, %v742_v37  }
 0x105   :  { %v823_v16 = vpop.permute.xlu2 %822  ;;  %v182_v35 = vpop.f32.mrf.mxu0 }
 0x106   :  { %v1959_v32 = vsel %vm804_vm0, %v823_v16, 0.0  ;;  %v463_v55 = vpop.f32.mrf.mxu1  ;;  %v183_v47 = vadd.f32 %v182_v35, %v1822_v33  ;;  %vm808_vm0 = vcmp.eq.s32.totalorder %v1953_v23, %v1861_v17  ;;  %v1008_v17 = vadd.f32 %v1942_v38, %v1822_v33 }
 0x107   :  { %v464_v49 = vadd.f32 %v463_v55, %v1822_v33  ;;  %v1970_v55 = vpop.f32.mrf.mxu3 }
 0x108   :  { %v744_v56 = vpop.f32.mrf.mxu2 }
 0x109   :  { %v1963_v60 = vpop.permute.xlu1 %1059  ;;  %v1965_v6 = vpop.permute.xlu0 %1056  ;;  %v745_v12 = vadd.f32 %v744_v56, %v1822_v33 }
 0x10a   :  { %2199 = vst [vmem:[#allocation21_spill] sm:$0xff] %v1963_v60 }
 0x10b   :  { %2200 = vst [vmem:[#allocation22_spill] sm:$0xff] %v1965_v6  ;;  %601 = vperm.xlu0 %1336, %v464_v49   ;;  %882 = vperm.xlu2 %1338, %v745_v12  }
 0x10c   :  { %320 = vperm.xlu1 %1337, %v183_v47  }
 0x10d   :  { %v266_v40 = vpop.permute.xlu2 %265  ;;  %v185_v37 = vpop.f32.mrf.mxu0 }
 0x10e   :  { %v339_v16 = vsel %vm243_vm1, %v266_v40, 0.0  ;;  %v466_v54 = vpop.f32.mrf.mxu1  ;;  %v186_v35 = vadd.f32 %v185_v37, %v1822_v33  ;;  %vm527_vm1 = vcmp.eq.s32.totalorder %v1953_v23, %v1845_v59 }
 0x10f   :  { %v467_v60 = vadd.f32 %v466_v54, %v1822_v33 }
 0x110   :  { %v747_v42 = vpop.f32.mrf.mxu2 }
 0x111   :  { %v1974_v6 = vpop.permute.xlu1 %1068  ;;  %v1976_v56 = vpop.permute.xlu0 %1065  ;;  %v748_v47 = vadd.f32 %v747_v42, %v1822_v33 }
 0x112   :  { %2201 = vst [vmem:[#allocation23_spill] sm:$0xff] %v1974_v6  ;;  %v1983_v6 = vpop.f32.mrf.mxu3 }
 0x113   :  { %2202 = vst [vmem:[#allocation24_spill] sm:$0xff] %v1976_v56  ;;  %887 = vperm.xlu0 %1336, %v748_v47   ;;  %325 = vperm.xlu2 %1338, %v186_v35  }
 0x114   :  { %606 = vperm.xlu1 %1337, %v467_v60  }
 0x115   :  { %v552_v53 = vpop.permute.xlu2 %551  ;;  %v188_v49 = vpop.f32.mrf.mxu0 }
 0x116   :  { %v621_v12 = vsel %vm525_vm2, %v552_v53, 0.0  ;;  %v469_v40 = vpop.f32.mrf.mxu1  ;;  %v189_v54 = vadd.f32 %v188_v49, %v1822_v33  ;;  %vm247_vm2 = vcmp.eq.s32.totalorder %v1953_v23, %v1632_v26 }
 0x117   :  { %v470_v37 = vadd.f32 %v469_v40, %v1822_v33 }
 0x118   :  { %v750_v13 = vpop.f32.mrf.mxu2 }
 0x119   :  { %v751_v56 = vadd.f32 %v750_v13, %v1822_v33 }
 0x11a   :  { %v542_v31 = vpop.permute.xlu0 %541  ;;  %v261_v42 = vpop.permute.xlu1 %260 }
 0x11b   :  { %v619_v60 = vsel %vm523_vm4, %v542_v31, 0.0  ;;  %v338_v35 = vsel %vm242_vm3, %v261_v42, 0.0  ;;  %330 = vperm.xlu0 %1336, %v189_v54   ;;  %611 = vperm.xlu2 %1338, %v470_v37   ;;  %vm531_vm3 = vcmp.eq.s32.totalorder %v1953_v23, %v1843_v58  ;;  %vm809_vm4 = vcmp.eq.s32.totalorder %v1953_v23, %v1899_v22 }
 0x11c   :  { %v354_v47 = vadd.f32 %v339_v16, %v338_v35  ;;  %892 = vperm.xlu1 %1337, %v751_v56   ;;  %v1997_v16 = vpop.f32.mrf.mxu3  ;;  %v1017_v58 = vadd.f32 %v1983_v6, %v1822_v33 }
 0x11d   :  { %v838_v53 = vpop.permute.xlu2 %837  ;;  %v191_v49 = vpop.f32.mrf.mxu0  ;;  %v1020_v26 = vadd.f32 %v1997_v16, %v1822_v33 }
 0x11e   :  { %v903_v13 = vsel %vm807_vm5, %v838_v53, 0.0  ;;  %v472_v40 = vpop.f32.mrf.mxu1  ;;  %v192_v20 = vadd.f32 %v191_v49, %v1822_v33  ;;  %v1330_v49 = vld [vmem:[%s2177_s1 + $0x1e0] sm:$0xff]  ;;  %vm529_vm5 = vcmp.eq.s32.totalorder %v1953_v23, %v1786_v19 }
 0x11f   :  { %v473_v43 = vadd.f32 %v472_v40, %v1822_v33 }
 0x120   :  { %v753_v63 = vpop.f32.mrf.mxu2 }
 0x121   :  { %v754_v21 = vadd.f32 %v753_v63, %v1822_v33 }
 0x122   :  { %v547_v37 = vpop.permute.xlu1 %546 }
 0x123   :  { %v620_v56 = vsel %vm524_vm6, %v547_v37, 0.0  ;;  %616 = vperm.xlu0 %1336, %v473_v43   ;;  %897 = vperm.xlu2 %1338, %v754_v21   ;;  %vm813_vm6 = vcmp.eq.s32.totalorder %v1953_v23, %v1908_v50 }
 0x124   :  { %v635_v61 = vadd.f32 %v620_v56, %v619_v60  ;;  %335 = vperm.xlu1 %1337, %v192_v20   ;;  %v1332_v20 = vld [vmem:[%s2177_s1 + $0x1f0] sm:$0xff]  ;;  %v2013_v21 = vpop.f32.mrf.mxu3  ;;  %v1333_v56 = vld [vmem:[%s2177_s1 + $0x1f8] sm:$0xff] }
 0x125   :  { %v828_v54 = vpop.permute.xlu0 %827  ;;  %v281_v31 = vpop.permute.xlu2 %280 }
 0x126   :  { %v901_v42 = vsel %vm805_vm8, %v828_v54, 0.0  ;;  %v342_v35 = vsel %vm246_vm7, %v281_v31, 0.0  ;;  %v636_v53 = vadd.f32 %v635_v61, %v621_v12  ;;  %vm248_vm7 = vcmp.eq.s32.totalorder %v1953_v23, %v1736_v0 }
 0x127   :  { %v916_v46 = vadd.f32 %v901_v42, %v1959_v32  ;;  %vm252_vm8 = vcmp.eq.s32.totalorder %v1953_v23, %v1761_v9 }
 0x12b   :  { %1074 = vperm.xlu0 %1336, %v1330_v49   ;;  %1080 = vperm.xlu2 %1338, %v1332_v20   ;;  %v996_v49 = vadd.f32 %v1891_v3, %v1822_v33 }
 0x12c   :  { %1077 = vperm.xlu1 %1337, %v1331_v15   ;;  %v1025_v42 = vpop.f32.mrf.mxu3 }
 0x12d   :  { %v271_v5 = vpop.permute.xlu0 %270  ;;  %v567_v32 = vpop.permute.xlu2 %566  ;;  %v1026_v19 = vadd.f32 %v1025_v42, %v1822_v33 }
 0x12e   :  { %v340_v12 = vsel %vm244_vm9, %v271_v5, 0.0  ;;  %v624_v60 = vsel %vm528_vm10, %v567_v32, 0.0  ;;  %v833_v40 = vpop.permute.xlu1 %832  ;;  %vm811_vm9 = vcmp.eq.s32.totalorder %v1953_v23, %v1872_v36  ;;  %vm530_vm10 = vcmp.eq.s32.totalorder %v1953_v23, %v1857_v11 }
 0x12f   :  { %v355_v43 = vadd.f32 %v354_v47, %v340_v12  ;;  %v902_v63 = vsel %vm806_vm11, %v833_v40, 0.0  ;;  %v1005_v12 = vadd.f32 %v1926_v2, %v1822_v33  ;;  %vm250_vm11 = vcmp.eq.s32.totalorder %v1953_v23, %v1655_v34 }
 0x130   :  { %v917_v37 = vadd.f32 %v916_v46, %v902_v63 }
 0x132   :  { %v918_v61 = vadd.f32 %v917_v37, %v903_v13 }
 0x133   :  { %1083 = vperm.xlu0 %1336, %v1333_v56   ;;  %1108 = vperm.xlu2 %1338, %v993_v39   ;;  %v1014_v56 = vadd.f32 %v1970_v55, %v1822_v33 }
 0x134   :  { %1103 = vperm.xlu1 %1337, %v990_v45   ;;  %v1028_v32 = vpop.f32.mrf.mxu3 }
 0x135   :  { %v557_v1 = vpop.permute.xlu0 %556  ;;  %v853_v47 = vpop.permute.xlu2 %852 }
 0x136   :  { %v622_v54 = vsel %vm526_vm12, %v557_v1, 0.0  ;;  %v906_v48 = vsel %vm810_vm13, %v853_v47, 0.0  ;;  %v276_v31 = vpop.permute.xlu1 %275  ;;  %vm534_vm12 = vcmp.eq.s32.totalorder %v1953_v23, %v1855_v7  ;;  %vm812_vm13 = vcmp.eq.s32.totalorder %v1953_v23, %v1910_v51 }
 0x137   :  { %v637_v27 = vadd.f32 %v636_v53, %v622_v54  ;;  %v341_v13 = vsel %vm245_vm14, %v276_v31, 0.0  ;;  %v1029_v31 = vadd.f32 %v1028_v32, %v1822_v33  ;;  %vm532_vm14 = vcmp.eq.s32.totalorder %v1953_v23, %v1813_v30 }
 0x138   :  { %v356_v46 = vadd.f32 %v355_v43, %v341_v13 }
 0x13a   :  { %v357_v20 = vadd.f32 %v356_v46, %v342_v35 }
 0x13b   :  { %1113 = vperm.xlu0 %1336, %v996_v49   ;;  %1123 = vperm.xlu2 %1338, %v1002_v8  }
 0x13c   :  { %1118 = vperm.xlu1 %1337, %v999_v18   ;;  %v1031_v39 = vpop.f32.mrf.mxu3 }
 0x13d   :  { %v843_v52 = vpop.permute.xlu0 %842  ;;  %v296_v53 = vpop.permute.xlu2 %295 }
 0x13e   :  { %v904_v3 = vsel %vm808_vm0, %v843_v52, 0.0  ;;  %v345_v4 = vsel %vm249_vm15, %v296_v53, 0.0  ;;  %v562_v15 = vpop.permute.xlu1 %561  ;;  %v1032_v52 = vadd.f32 %v1031_v39, %v1822_v33  ;;  %vm816_vm15 = vcmp.eq.s32.totalorder %v1953_v23, %v1919_v25  ;;  %v2203_v39 = vld [vmem:[#allocation5_spill] sm:$0xff] }
 0x13f   :  { %v919_v5 = vadd.f32 %v918_v61, %v904_v3  ;;  %v623_v28 = vsel %vm527_vm1, %v562_v15, 0.0  ;;  %vm251_vm0 = vcmp.eq.s32.totalorder %v1953_v23, %v1763_v10  ;;  %vm814_vm1 = vcmp.eq.s32.totalorder %v1953_v23, %v1884_v57 }
 0x140   :  { %v638_v35 = vadd.f32 %v637_v27, %v623_v28 }
 0x142   :  { %v639_v40 = vadd.f32 %v638_v35, %v624_v60 }
 0x143   :  { %1128 = vperm.xlu0 %1336, %v1005_v12   ;;  %1138 = vperm.xlu2 %1338, %v1011_v62  }
 0x144   :  { %1133 = vperm.xlu1 %1337, %v1008_v17   ;;  %v1034_v50 = vpop.f32.mrf.mxu3 }
 0x145   :  { %v286_v59 = vpop.permute.xlu0 %285  ;;  %v582_v43 = vpop.permute.xlu2 %581 }
 0x146   :  { %v343_v2 = vsel %vm247_vm2, %v286_v59, 0.0  ;;  %v627_v14 = vsel %vm531_vm3, %v582_v43, 0.0  ;;  %v848_v63 = vpop.permute.xlu1 %847  ;;  %vm533_vm2 = vcmp.eq.s32.totalorder %v1953_v23, %v1866_v24  ;;  %vm253_vm3 = vcmp.eq.s32.totalorder %v1953_v23, %v1682_v44 }
 0x147   :  { %v358_v37 = vadd.f32 %v357_v20, %v343_v2  ;;  %v905_v38 = vsel %vm809_vm4, %v848_v63, 0.0  ;;  %v1035_v20 = vadd.f32 %v1034_v50, %v1822_v33  ;;  %vm815_vm4 = vcmp.eq.s32.totalorder %v1953_v23, %v1921_v29  ;;  %v2207_v50 = vld [vmem:[#allocation8_spill] sm:$0xff] }
 0x148   :  { %v920_v60 = vadd.f32 %v919_v5, %v905_v38 }
 0x14a   :  { %v921_v45 = vadd.f32 %v920_v60, %v906_v48  ;;  %v1023_v48 = vadd.f32 %v2013_v21, %v1822_v33 }
 0x14b   :  { %1143 = vperm.xlu0 %1336, %v1014_v56   ;;  %1153 = vperm.xlu2 %1338, %v1020_v26  }
 0x14c   :  { %1148 = vperm.xlu1 %1337, %v1017_v58  }
 0x14d   :  { %v572_v22 = vpop.permute.xlu0 %571  ;;  %v868_v61 = vpop.permute.xlu2 %867 }
 0x14e   :  { %v625_v55 = vsel %vm529_vm5, %v572_v22, 0.0  ;;  %v909_v16 = vsel %vm813_vm6, %v868_v61, 0.0  ;;  %v291_v1 = vpop.permute.xlu1 %290  ;;  %vm535_vm5 = vcmp.eq.s32.totalorder %v1953_v23, %v1829_v41  ;;  %vm254_vm6 = vcmp.eq.s32.totalorder %v1953_v23, %v2203_v39  ;;  %v2206_v41 = vld [vmem:[#allocation9_spill] sm:$0xff]  ;;  %v2213_v39 = vld [vmem:[#allocation16_spill] sm:$0xff] }
 0x14f   :  { %v640_v6 = vadd.f32 %v639_v40, %v625_v55  ;;  %v344_v47 = vsel %vm248_vm7, %v291_v1, 0.0  ;;  %v2204_v55 = vld [vmem:[#allocation4_spill] sm:$0xff] }
 0x150   :  { %v359_v54 = vadd.f32 %v358_v37, %v344_v47  ;;  %vm255_vm7 = vcmp.eq.s32.totalorder %v1953_v23, %v2204_v55  ;;  %v2205_v47 = vld [vmem:[#allocation10_spill] sm:$0xff] }
 0x152   :  { %v360_v27 = vadd.f32 %v359_v54, %v345_v4 }
 0x153   :  { %1158 = vperm.xlu0 %1336, %v1023_v48   ;;  %1168 = vperm.xlu2 %1338, %v1029_v31  }
 0x154   :  { %1163 = vperm.xlu1 %1337, %v1026_v19  }
 0x155   :  { %v858_v0 = vpop.permute.xlu0 %857  ;;  %v311_v13 = vpop.permute.xlu2 %310 }
 0x156   :  { %v907_v21 = vsel %vm811_vm9, %v858_v0, 0.0  ;;  %v348_v46 = vsel %vm252_vm8, %v311_v13, 0.0  ;;  %v577_v49 = vpop.permute.xlu1 %576  ;;  %vm817_vm8 = vcmp.eq.s32.totalorder %v1953_v23, %v2205_v47  ;;  %vm536_vm9 = vcmp.eq.s32.totalorder %v1953_v23, %v2206_v41  ;;  %v2215_v47 = vld [vmem:[#allocation11_spill] sm:$0xff] }
 0x157   :  { %v922_v42 = vadd.f32 %v921_v45, %v907_v21  ;;  %v626_v8 = vsel %vm530_vm10, %v577_v49, 0.0  ;;  %vm537_vm10 = vcmp.eq.s32.totalorder %v1953_v23, %v2207_v50  ;;  %v1340_v50 = vmov 0.0  }
 0x158   :  { %v641_v18 = vadd.f32 %v640_v6, %v626_v8  ;;  %v2209_v8 = vld [vmem:[#allocation14_spill] sm:$0xff]  ;;  %76 = vst [vmem:[%s2180_s4] sm:$0x1] %v1340_v50 }
 0x15a   :  { %v642_v53 = vadd.f32 %v641_v18, %v627_v14 }
 0x15b   :  { %1173 = vperm.xlu0 %1336, %v1032_v52  }
 0x15c   :  { %1178 = vperm.xlu1 %1337, %v1035_v20  }
 0x15d   :  { %v301_v9 = vpop.permute.xlu0 %300  ;;  %v597_v11 = vpop.permute.xlu2 %596 }
 0x15e   :  { %v346_v36 = vsel %vm250_vm11, %v301_v9, 0.0  ;;  %v630_v3 = vsel %vm534_vm12, %v597_v11, 0.0  ;;  %v863_v4 = vpop.permute.xlu1 %862  ;;  %vm818_vm12 = vcmp.eq.s32.totalorder %v1953_v23, %v2209_v8  ;;  %v2210_v9 = vld [vmem:[#allocation13_spill] sm:$0xff] }
 0x15f   :  { %v361_v15 = vadd.f32 %v360_v27, %v346_v36  ;;  %v908_v5 = vsel %vm812_vm13, %v863_v4, 0.0  ;;  %vm819_vm13 = vcmp.eq.s32.totalorder %v1953_v23, %v2210_v9 }
 0x160   :  { %v923_v33 = vadd.f32 %v922_v42, %v908_v5 }
 0x162   :  { %v924_v28 = vadd.f32 %v923_v33, %v909_v16  ;;  %v2212_v33 = vld [vmem:[#allocation6_spill] sm:$0xff] }
 0x165   :  { %v587_v34 = vpop.permute.xlu0 %586  ;;  %v883_v7 = vpop.permute.xlu2 %882 }
 0x166   :  { %v628_v35 = vsel %vm532_vm14, %v587_v34, 0.0  ;;  %v912_v51 = vsel %vm816_vm15, %v883_v7, 0.0  ;;  %v306_v32 = vpop.permute.xlu1 %305  ;;  %vm257_vm15 = vcmp.eq.s32.totalorder %v1953_v23, %v2212_v33 }
 0x167   :  { %v643_v12 = vadd.f32 %v642_v53, %v628_v35  ;;  %v347_v62 = vsel %vm251_vm0, %v306_v32, 0.0  ;;  %vm1086_vm0 = vcmp.eq.s32.totalorder %v1953_v23, %v2213_v39 }
 0x168   :  { %v362_v17 = vadd.f32 %v361_v15, %v347_v62  ;;  %v2211_v15 = vld [vmem:[#allocation7_spill] sm:$0xff] }
 0x169   :  { %vm538_vm14 = vcmp.eq.s32.totalorder %v1953_v23, %v2211_v15  ;;  %v2221_v15 = vld [vmem:[#allocation15_spill] sm:$0xff] }
 0x16a   :  { %v363_v40 = vadd.f32 %v362_v17, %v348_v46  ;;  %v2208_v46 = vld [vmem:[#allocation3_spill] sm:$0xff] }
 0x16b   :  { %vm256_vm11 = vcmp.eq.s32.totalorder %v1953_v23, %v2208_v46 }
 0x16d   :  { %v873_v59 = vpop.permute.xlu0 %872  ;;  %v326_v26 = vpop.permute.xlu2 %325 }
 0x16e   :  { %v910_v30 = vsel %vm814_vm1, %v873_v59, 0.0  ;;  %v592_v25 = vpop.permute.xlu1 %591  ;;  %v351_v16 = vsel %vm255_vm7, %v326_v26, 0.0 }
 0x16f   :  { %v925_v43 = vadd.f32 %v924_v28, %v910_v30  ;;  %v629_v2 = vsel %vm533_vm2, %v592_v25, 0.0  ;;  %vm1087_vm2 = vcmp.eq.s32.totalorder %v1953_v23, %v2215_v47 }
 0x170   :  { %v644_v14 = vadd.f32 %v643_v12, %v629_v2 }
 0x172   :  { %v645_v10 = vadd.f32 %v644_v14, %v630_v3 }
 0x175   :  { %v316_v63 = vpop.permute.xlu0 %315  ;;  %v612_v6 = vpop.permute.xlu2 %611 }
 0x176   :  { %v349_v37 = vsel %vm253_vm3, %v316_v63, 0.0  ;;  %v878_v38 = vpop.permute.xlu1 %877  ;;  %v633_v13 = vsel %vm537_vm10, %v612_v6, 0.0 }
 0x177   :  { %v364_v57 = vadd.f32 %v363_v40, %v349_v37  ;;  %v911_v60 = vsel %vm815_vm4, %v878_v38, 0.0 }
 0x178   :  { %v926_v56 = vadd.f32 %v925_v43, %v911_v60 }
 0x17a   :  { %v927_v24 = vadd.f32 %v926_v56, %v912_v51 }
 0x17d   :  { %v602_v58 = vpop.permute.xlu0 %601  ;;  %v898_v49 = vpop.permute.xlu2 %897 }
 0x17e   :  { %v631_v45 = vsel %vm535_vm5, %v602_v58, 0.0  ;;  %v321_v44 = vpop.permute.xlu1 %320  ;;  %v915_v36 = vsel %vm819_vm13, %v898_v49, 0.0  ;;  %v2218_v49 = vld [vmem:[#allocation12_spill] sm:$0xff] }
 0x17f   :  { %v646_v22 = vadd.f32 %v645_v10, %v631_v45  ;;  %v350_v61 = vsel %vm254_vm6, %v321_v44, 0.0  ;;  %v2214_v45 = vld [vmem:[#allocation17_spill] sm:$0xff]  ;;  %vm1090_vm5 = vcmp.eq.s32.totalorder %v1953_v23, %v2218_v49 }
 0x180   :  { %v365_v29 = vadd.f32 %v364_v57, %v350_v61  ;;  %vm1085_vm1 = vcmp.eq.s32.totalorder %v1953_v23, %v2214_v45 }
 0x182   :  { %v366_v1 = vadd.f32 %v365_v29, %v351_v16 }
 0x185   :  { %v888_v54 = vpop.permute.xlu0 %887  ;;  %v2124_v35 = vpop.permute.xlu2 %1080 }
 0x186   :  { %v913_v48 = vsel %vm817_vm8, %v888_v54, 0.0  ;;  %v607_v31 = vpop.permute.xlu1 %606  ;;  %vm1093_vm8 = vcmp.eq.s32.totalorder %v1953_v23, %v2221_v15 }
 0x187   :  { %v928_v19 = vadd.f32 %v927_v24, %v913_v48  ;;  %v632_v27 = vsel %vm536_vm9, %v607_v31, 0.0  ;;  %v2216_v31 = vld [vmem:[#allocation20_spill] sm:$0xff] }
 0x188   :  { %v647_v0 = vadd.f32 %v646_v22, %v632_v27  ;;  %vm1088_vm3 = vcmp.eq.s32.totalorder %v1953_v23, %v2216_v31 }
 0x18a   :  { %v648_v21 = vadd.f32 %v647_v0, %v633_v13  ;;  %v2217_v0 = vld [vmem:[#allocation19_spill] sm:$0xff] }
 0x18b   :  { %vm1089_vm4 = vcmp.eq.s32.totalorder %v1953_v23, %v2217_v0 }
 0x18d   :  { %v331_v42 = vpop.permute.xlu0 %330  ;;  %v1109_v38 = vpop.permute.xlu2 %1108 }
 0x18e   :  { %v352_v18 = vsel %vm256_vm11, %v331_v42, 0.0  ;;  %v893_v20 = vpop.permute.xlu1 %892  ;;  %v1182_v55 = vsel %vm1086_vm0, %v1109_v38, 0.0 }
 0x18f   :  { %v367_v52 = vadd.f32 %v366_v1, %v352_v18  ;;  %v914_v53 = vsel %vm818_vm12, %v893_v20, 0.0 }
 0x190   :  { %v929_v11 = vadd.f32 %v928_v19, %v914_v53 }
 0x192   :  { %v930_v3 = vadd.f32 %v929_v11, %v915_v36  ;;  %v2220_v11 = vld [vmem:[#allocation21_spill] sm:$0xff] }
 0x193   :  { %vm1092_vm7 = vcmp.eq.s32.totalorder %v1953_v23, %v2220_v11 }
 0x194   :  { %v931_v4 = vrot.slane %v930_v3, 4 }
 0x195   :  { %v617_v5 = vpop.permute.xlu0 %616  ;;  %v1124_v6 = vpop.permute.xlu2 %1123 }
 0x196   :  { %v932_v28 = vadd.f32 %v931_v4, %v930_v3  ;;  %v634_v34 = vsel %vm538_vm14, %v617_v5, 0.0  ;;  %v336_v7 = vpop.permute.xlu1 %335  ;;  %vm1099_vm14 = vcmp.eq.s32.totalorder %v1953_v23, %v2124_v35  ;;  %v1219_v35 = vld [vmem:[%s2180_s4] sm:$0x1] }
 0x197   :  { %v649_v51 = vadd.f32 %v648_v21, %v634_v34  ;;  %v353_v32 = vsel %vm257_vm15, %v336_v7, 0.0  ;;  %v1185_v21 = vsel %vm1089_vm4, %v1124_v6, 0.0  ;;  %v2222_v34 = vld [vmem:[#allocation24_spill] sm:$0xff] }
 0x198   :  { %v368_v12 = vadd.f32 %v367_v52, %v353_v32  ;;  %v933_v17 = vrot.slane %v932_v28, 2  ;;  %v2219_v52 = vld [vmem:[#allocation22_spill] sm:$0xff]  ;;  %vm1094_vm9 = vcmp.eq.s32.totalorder %v1953_v23, %v2222_v34 }
 0x199   :  { %v650_v62 = vrot.slane %v649_v51, 4  ;;  %vm1091_vm6 = vcmp.eq.s32.totalorder %v1953_v23, %v2219_v52 }
 0x19a   :  { %v369_v40 = vrot.slane %v368_v12, 4  ;;  %v934_v2 = vadd.f32 %v933_v17, %v932_v28 }
 0x19b   :  { %v651_v59 = vadd.f32 %v650_v62, %v649_v51 }
 0x19c   :  { %v370_v30 = vadd.f32 %v369_v40, %v368_v12  ;;  %v935_v60 = vrot.slane %v934_v2, 1  ;;  %v2223_v12 = vld [vmem:[#allocation23_spill] sm:$0xff] }
 0x19d   :  { %v652_v25 = vrot.slane %v651_v59, 2  ;;  %v2126_v43 = vpop.permute.xlu0 %1074  ;;  %v1139_v42 = vpop.permute.xlu2 %1138  ;;  %vm1095_vm10 = vcmp.eq.s32.totalorder %v1953_v23, %v2223_v12 }
 0x19e   :  { %v371_v14 = vrot.slane %v370_v30, 2  ;;  %v2128_v10 = vpop.permute.xlu1 %1077  ;;  %v936_v44 = vadd.f32 %v935_v60, %v934_v2  ;;  %v1188_v3 = vsel %vm1092_vm7, %v1139_v42, 0.0  ;;  %vm1097_vm12 = vcmp.eq.s32.totalorder %v1953_v23, %v2126_v43 }
 0x19f   :  { %v653_v63 = vadd.f32 %v652_v25, %v651_v59  ;;  %v2224_v59 = vld [vmem:[#allocation18_spill] sm:$0xff]  ;;  %vm1098_vm13 = vcmp.eq.s32.totalorder %v1953_v23, %v2128_v10 }
 0x1a0   :  { %v372_v37 = vadd.f32 %v371_v14, %v370_v30  ;;  %vm1096_vm11 = vcmp.eq.s32.totalorder %v1953_v23, %v2224_v59 }
 0x1a1   :  { %v654_v57 = vrot.slane %v653_v63, 1 }
 0x1a2   :  { %v373_v56 = vrot.slane %v372_v37, 1 }
 0x1a3   :  { %v655_v26 = vadd.f32 %v654_v57, %v653_v63 }
 0x1a4   :  { %v374_v24 = vadd.f32 %v373_v56, %v372_v37 }
 0x1a5   :  { %v2130_v58 = vpop.permute.xlu0 %1083  ;;  %v1154_v7 = vpop.permute.xlu2 %1153 }
 0x1a6   :  { %v656_v22 = vadd.f32 %v655_v26, %v374_v24  ;;  %v1104_v61 = vpop.permute.xlu1 %1103  ;;  %v1191_v17 = vsel %vm1095_vm10, %v1154_v7, 0.0  ;;  %vm1100_vm15 = vcmp.eq.s32.totalorder %v1953_v23, %v2130_v58 }
 0x1a7   :  { %v1181_v29 = vsel %vm1085_vm1, %v1104_v61, 0.0 }
 0x1a8   :  { %v1197_v16 = vadd.f32 %v1182_v55, %v1181_v29  ;;  %v2136_v1 = vadd.f32 %v936_v44, %v656_v22 }
 0x1ad   :  { %v1114_v54 = vpop.permute.xlu0 %1113  ;;  %v1169_v37 = vpop.permute.xlu2 %1168 }
 0x1ae   :  { %v1183_v41 = vsel %vm1087_vm2, %v1114_v54, 0.0  ;;  %v1119_v48 = vpop.permute.xlu1 %1118  ;;  %v1194_v57 = vsel %vm1098_vm13, %v1169_v37, 0.0 }
 0x1af   :  { %v1198_v19 = vadd.f32 %v1197_v16, %v1183_v41  ;;  %v1184_v27 = vsel %vm1088_vm3, %v1119_v48, 0.0 }
 0x1b1   :  { %v1199_v13 = vadd.f32 %v1198_v19, %v1184_v27 }
 0x1b3   :  { %v1200_v46 = vadd.f32 %v1199_v13, %v1185_v21 }
 0x1b5   :  { %v1129_v8 = vpop.permute.xlu0 %1128 }
 0x1b6   :  { %v1186_v18 = vsel %vm1090_vm5, %v1129_v8, 0.0  ;;  %v1134_v20 = vpop.permute.xlu1 %1133 }
 0x1b7   :  { %v1201_v53 = vadd.f32 %v1200_v46, %v1186_v18  ;;  %v1187_v9 = vsel %vm1091_vm6, %v1134_v20, 0.0 }
 0x1b9   :  { %v1202_v36 = vadd.f32 %v1201_v53, %v1187_v9 }
 0x1bb   :  { %v1203_v4 = vadd.f32 %v1202_v36, %v1188_v3 }
 0x1bd   :  { %v1144_v5 = vpop.permute.xlu0 %1143 }
 0x1be   :  { %v1189_v33 = vsel %vm1093_vm8, %v1144_v5, 0.0  ;;  %v1149_v28 = vpop.permute.xlu1 %1148 }
 0x1bf   :  { %v1204_v51 = vadd.f32 %v1203_v4, %v1189_v33  ;;  %v1190_v32 = vsel %vm1094_vm9, %v1149_v28, 0.0 }
 0x1c1   :  { %v1205_v62 = vadd.f32 %v1204_v51, %v1190_v32 }
 0x1c3   :  { %v1206_v40 = vadd.f32 %v1205_v62, %v1191_v17 }
 0x1c5   :  { %v1159_v30 = vpop.permute.xlu0 %1158 }
 0x1c6   :  { %v1192_v25 = vsel %vm1096_vm11, %v1159_v30, 0.0  ;;  %v1164_v2 = vpop.permute.xlu1 %1163 }
 0x1c7   :  { %v1207_v14 = vadd.f32 %v1206_v40, %v1192_v25  ;;  %v1193_v63 = vsel %vm1097_vm12, %v1164_v2, 0.0 }
 0x1c9   :  { %v1208_v38 = vadd.f32 %v1207_v14, %v1193_v63 }
 0x1cb   :  { %v1209_v56 = vadd.f32 %v1208_v38, %v1194_v57 }
 0x1cd   :  { %v1174_v60 = vpop.permute.xlu0 %1173 }
 0x1ce   :  { %v1195_v26 = vsel %vm1099_vm14, %v1174_v60, 0.0  ;;  %v1179_v24 = vpop.permute.xlu1 %1178 }
 0x1cf   :  { %v1210_v39 = vadd.f32 %v1209_v56, %v1195_v26  ;;  %v1196_v43 = vsel %vm1100_vm15, %v1179_v24, 0.0 }
 0x1d1   :  { %v1211_v45 = vadd.f32 %v1210_v39, %v1196_v43 }
 0x1d3   :  { %v1212_v44 = vrot.slane %v1211_v45, 4 }
 0x1d5   :  { %v1213_v22 = vadd.f32 %v1212_v44, %v1211_v45 }
 0x1d7   :  { %v1214_v61 = vrot.slane %v1213_v22, 2 }
 0x1d9   :  { %v1215_v55 = vadd.f32 %v1214_v61, %v1213_v22 }
 0x1db   :  { %v1216_v29 = vrot.slane %v1215_v55, 1 }
 0x1dd   :  { %v1217_v10 = vadd.f32 %v1216_v29, %v1215_v55 }
 0x1df   :  { %v1218_v16 = vadd.f32 %v1217_v10, %v2136_v1 }
 0x1e1   :  { %v1220_v6 = vadd.f32 %v1219_v35, %v1218_v16 }
 0x1e3   :  { %1221 = vst [vmem:[%s2180_s4] sm:$0x1] %v1220_v6 }

</bundles_post_ra>
